<compile_context>
chip_gen: v7x
topology: tpu7x:2x2x1
jax: 0.10.0
libtpu: 0.0.40
codegen_flags: <defaults>
</compile_context>

<pallas_src>
import math

import jax
import jax.numpy as jnp
from jax import lax
from jax.experimental import pallas as pl
from jax.experimental.pallas import tpu as pltpu

# ---- static configuration (small shapes consistent with the module) ----
B = 2
L = 8
D_MODEL = 32
D_STATE = 8
D_CONV = 4
EXPAND = 2
NUM_LAYERS = 2                      # >1 -> residual add before first LayerNorm
D_INNER = EXPAND * D_MODEL          # 64
DT_RANK = math.ceil(D_MODEL / 16)   # 2
FFN_INNER = 4 * D_MODEL             # 128
LN_EPS = 1e-12                      # nn.LayerNorm(..., eps=1e-12)
BL = B * L
OUT_COLS = 128                      # lane-dense output width

# ---- bf16 matmul-weight slab layout (rows; 128 lanes) ----
W_COLS = 128
ROW_WIN = 0                          # (D_MODEL,  2*D_INNER)   in_proj [x | z]
ROW_FFN1 = ROW_WIN + D_MODEL         # (D_MODEL,  FFN_INNER)   ffn.w_1
ROW_WXF = ROW_FFN1 + D_MODEL         # (D_INNER,  80)          fused x_proj+dt_proj [dW | B | C]
ROW_WOUT = ROW_WXF + D_INNER         # (D_INNER,  D_MODEL)     out_proj
ROW_FFN2 = ROW_WOUT + D_INNER        # (FFN_INNER, D_MODEL)    ffn.w_2
W_ROWS = ROW_FFN2 + FFN_INNER        # 320 rows x 128 lanes, bf16 = 80 KB

# ---- f32 vector / small-param slab layout (rows; 128 lanes) ----
V_COLS = 128
(V_CONV_B, V_B_DT, V_D, V_LN1_G, V_LN1_B,
 V_FFN_B1, V_FFN_B2, V_LN2_G, V_LN2_B) = range(9)
V_ALOGT = 16                         # (D_STATE, D_INNER) A_log transposed
V_CONVW = 24                         # (D_CONV,  D_INNER) depthwise conv weight
V_ROWS = 32                          # 32 rows x 128 lanes, f32 = 16 KB


# ---------------- in-kernel math helpers (VPU/EUP friendly, f32) -------------
def _silu(x):
    return x * jax.nn.sigmoid(x)


def _softplus(x):
    # numerically stable softplus using only exp/log
    return jnp.maximum(x, 0.0) + jnp.log(1.0 + jnp.exp(-jnp.abs(x)))


def _erf(x):
    # Abramowitz-Stegun 7.1.26 polynomial, max abs error ~1.5e-7 (only exp on EUP).
    a1, a2, a3, a4, a5 = 0.254829592, -0.284496736, 1.421413741, -1.453152027, 1.061405429
    p = 0.3275911
    ax = jnp.abs(x)
    t = 1.0 / (1.0 + p * ax)
    poly = t * (a1 + t * (a2 + t * (a3 + t * (a4 + t * a5))))
    r = 1.0 - poly * jnp.exp(-ax * ax)
    return jnp.where(x >= 0.0, r, -r)


def _gelu(x):
    # exact-erf GELU (matches nn.GELU default) via the polynomial above
    return 0.5 * x * (1.0 + _erf(x * 0.7071067811865476))


def _layer_norm(x, g, b, eps=LN_EPS):
    mean = jnp.mean(x, axis=-1, keepdims=True)
    var = jnp.mean((x - mean) ** 2, axis=-1, keepdims=True)
    return (x - mean) * lax.rsqrt(var + eps) * g + b


# ------------------------------ the kernel ----------------------------------
# One grid step = one sequence (batch element): L rows of the folded (BL, .) slabs.
def mamba_layer_kernel(x_ref, w_ref, v_ref, out_ref):
    x_in = x_ref[...]                                           # (L, d_model) f32
    x_bf = x_in.astype(jnp.bfloat16)

    # ---- Mamba in_proj: one lane-dense bf16 (32 x 128) matmul, split x/z ----
    xz = jnp.dot(x_bf, w_ref[ROW_WIN:ROW_WIN + D_MODEL, :],
                 preferred_element_type=jnp.float32)            # (L, 2*d_inner)
    xm = xz[:, :D_INNER]
    z = xz[:, D_INNER:]

    # ---- causal depthwise conv1d (+ SiLU); explicit zero-prepend shifts ----
    conv_w = v_ref[V_CONVW:V_CONVW + D_CONV, :D_INNER]          # (d_conv, d_inner) f32
    conv_b = v_ref[V_CONV_B:V_CONV_B + 1, :D_INNER]             # (1, d_inner)
    acc = xm * conv_w[D_CONV - 1:D_CONV, :]                     # tap, shift 0
    for s in range(1, D_CONV):                                  # static unrolled taps
        tap = conv_w[D_CONV - 1 - s:D_CONV - s, :]
        shifted = jnp.concatenate(
            [jnp.zeros((s, D_INNER), jnp.float32), xm[:L - s, :]], axis=0)
        acc = acc + shifted * tap
    u = _silu(acc + conv_b)                                     # (L, d_inner)

    # ---- fused x_proj + dt_proj: one bf16 (64 x 128) matmul ----
    # columns: [delta_pre (64) | B (8) | C (8) | pad]
    xproj = jnp.dot(u.astype(jnp.bfloat16), w_ref[ROW_WXF:ROW_WXF + D_INNER, :],
                    preferred_element_type=jnp.float32)         # (L, 128)
    delta = _softplus(xproj[:, :D_INNER] + v_ref[V_B_DT:V_B_DT + 1, :D_INNER])
    # single consolidated lane->sublane relayout for B and C
    BC_T = jnp.transpose(xproj[:, D_INNER:D_INNER + 2 * D_STATE])   # (2*d_state, L)

    # ---- selective scan: d_inner on lanes, d_state on sublanes ----
    A_T = -jnp.exp(v_ref[V_ALOGT:V_ALOGT + D_STATE, :D_INNER])  # (d_state, d_inner)
    du = delta * u                                              # (L, d_inner)
    row_idx = lax.broadcasted_iota(jnp.int32, (L, D_INNER), 0)

    h = jnp.zeros((D_STATE, D_INNER), jnp.float32)
    y = jnp.zeros((L, D_INNER), jnp.float32)
    for t in range(L):                                          # static unroll, stays in vregs
        dA_t = jnp.exp(delta[t:t + 1, :] * A_T)                 # (d_state, d_inner)
        B_t = BC_T[:D_STATE, t:t + 1]                           # (d_state, 1)
        C_t = BC_T[D_STATE:, t:t + 1]                           # (d_state, 1)
        h = dA_t * h + du[t:t + 1, :] * B_t
        y_t = jnp.sum(h * C_t, axis=0, keepdims=True)           # (1, d_inner)
        y = jnp.where(row_idx == t, y_t, y)                     # per-step write, no concat

    y = y + u * v_ref[V_D:V_D + 1, :D_INNER]                    # + D * u skip
    y = y * _silu(z)                                            # gate
    mamba_out = jnp.dot(y.astype(jnp.bfloat16),
                        w_ref[ROW_WOUT:ROW_WOUT + D_INNER, :D_MODEL],
                        preferred_element_type=jnp.float32)     # (L, d_model)

    # ---- MambaLayer: dropout(eval)=identity, LayerNorm (+ residual) ----
    if NUM_LAYERS == 1:
        ln_in = mamba_out
    else:
        ln_in = mamba_out + x_in
    h1 = _layer_norm(ln_in,
                     v_ref[V_LN1_G:V_LN1_G + 1, :D_MODEL],
                     v_ref[V_LN1_B:V_LN1_B + 1, :D_MODEL])

    # ---- FeedForward: Linear -> GELU -> Linear -> residual LayerNorm ----
    hid = jnp.dot(h1.astype(jnp.bfloat16), w_ref[ROW_FFN1:ROW_FFN1 + D_MODEL, :],
                  preferred_element_type=jnp.float32) + v_ref[V_FFN_B1:V_FFN_B1 + 1, :]
    hid = _gelu(hid)
    hid2 = jnp.dot(hid.astype(jnp.bfloat16),
                   w_ref[ROW_FFN2:ROW_FFN2 + FFN_INNER, :D_MODEL],
                   preferred_element_type=jnp.float32)
    hid2 = hid2 + v_ref[V_FFN_B2:V_FFN_B2 + 1, :D_MODEL]
    out = _layer_norm(hid2 + h1,
                      v_ref[V_LN2_G:V_LN2_G + 1, :D_MODEL],
                      v_ref[V_LN2_B:V_LN2_B + 1, :D_MODEL])

    # lane-dense (L, 128) store; wrapper slices back to d_model
    out_ref[...] = jnp.concatenate(
        [out, jnp.zeros((L, OUT_COLS - D_MODEL), jnp.float32)],
        axis=1).astype(out_ref.dtype)


# --------------------- packing (runs ONCE, outside the jitted forward) -------
def _pad_cols(a, cols):
    return jnp.pad(a, ((0, 0), (0, cols - a.shape[1])))


def pack_params(p):
    """Pack all weights into one bf16 matmul slab and one f32 vector slab."""
    w_in = jnp.concatenate([p["w_in_x"], p["w_in_z"]], axis=1)            # (32, 128)
    # dt_proj fused into x_proj: u @ (w_x_dt @ w_dt) == (u @ w_x_dt) @ w_dt
    w_xf = jnp.concatenate([p["w_x_dt"] @ p["w_dt"], p["w_x_B"], p["w_x_C"]],
                           axis=1)                                        # (64, 80)
    w_blocks = [
        _pad_cols(w_in, W_COLS),          # rows [0, 32)
        _pad_cols(p["ffn_w1"], W_COLS),   # rows [32, 64)
        _pad_cols(w_xf, W_COLS),          # rows [64, 128)
        _pad_cols(p["w_out"], W_COLS),    # rows [128, 192)
        _pad_cols(p["ffn_w2"], W_COLS),   # rows [192, 320)
    ]
    w_slab = jnp.concatenate(w_blocks, axis=0).astype(jnp.bfloat16)
    assert w_slab.shape == (W_ROWS, W_COLS), w_slab.shape

    v_rows = [p["conv_b"], p["b_dt"], p["D"], p["ln1_g"], p["ln1_b"],
              p["ffn_b1"], p["ffn_b2"], p["ln2_g"], p["ln2_b"]]
    v_blocks = [_pad_cols(r, V_COLS) for r in v_rows]
    v_blocks.append(jnp.zeros((V_ALOGT - len(v_rows), V_COLS), jnp.float32))
    v_blocks.append(_pad_cols(p["A_log"].T, V_COLS))                      # (8, 128)
    v_blocks.append(_pad_cols(p["conv_w"], V_COLS))                       # (4, 128)
    v_blocks.append(jnp.zeros((V_ROWS - V_CONVW - D_CONV, V_COLS), jnp.float32))
    v_slab = jnp.concatenate(v_blocks, axis=0)
    assert v_slab.shape == (V_ROWS, V_COLS), v_slab.shape
    return w_slab, v_slab


# ------------------------------ jitted wrapper -------------------------------
@jax.jit
def mamba_layer_forward(x, w_slab, v_slab):
    x2 = x.reshape(BL, D_MODEL)
    out = pl.pallas_call(
        mamba_layer_kernel,
        out_shape=jax.ShapeDtypeStruct((BL, OUT_COLS), jnp.float32),
        grid=(B,),
        in_specs=[
            pl.BlockSpec((L, D_MODEL), lambda b: (b, 0)),
            pl.BlockSpec((W_ROWS, W_COLS), lambda b: (0, 0)),   # resident across steps
            pl.BlockSpec((V_ROWS, V_COLS), lambda b: (0, 0)),   # resident across steps
        ],
        out_specs=pl.BlockSpec((L, OUT_COLS), lambda b: (b, 0)),
        compiler_params=pltpu.CompilerParams(
            dimension_semantics=("parallel",)),                 # v7x: one sequence per TC
    )(x2, w_slab, v_slab)
    return out[:, :D_MODEL].reshape(B, L, D_MODEL)


def init_params(key):
    ks = jax.random.split(key, 11)

    def nrm(k, shape, scale=0.02):
        return scale * jax.random.normal(k, shape, jnp.float32)

    return dict(
        # in_proj (bias=False), split into x / z halves
        w_in_x=nrm(ks[0], (D_MODEL, D_INNER)),
        w_in_z=nrm(ks[1], (D_MODEL, D_INNER)),
        # depthwise conv1d weight (d_conv, d_inner) + bias
        conv_w=nrm(ks[2], (D_CONV, D_INNER), 0.1),
        conv_b=nrm(ks[3], (1, D_INNER), 0.1),
        # x_proj (bias=False), split into dt / B / C columns
        w_x_dt=nrm(ks[4], (D_INNER, DT_RANK)),
        w_x_B=nrm(ks[5], (D_INNER, D_STATE)),
        w_x_C=nrm(ks[6], (D_INNER, D_STATE)),
        # dt_proj (bias=True)
        w_dt=nrm(ks[7], (DT_RANK, D_INNER), 0.1),
        b_dt=jnp.full((1, D_INNER), -4.0, jnp.float32),   # softplus(-4) ~ 0.018
        # S4D-real init of A_log, skip-connection D
        A_log=jnp.log(jnp.broadcast_to(
            jnp.arange(1, D_STATE + 1, dtype=jnp.float32)[None, :],
            (D_INNER, D_STATE)) + 0.0),
        D=jnp.ones((1, D_INNER), jnp.float32),
        # out_proj (bias=False)
        w_out=nrm(ks[8], (D_INNER, D_MODEL)),
        # MambaLayer.LayerNorm
        ln1_g=jnp.ones((1, D_MODEL), jnp.float32),
        ln1_b=jnp.zeros((1, D_MODEL), jnp.float32),
        # FeedForward
        ffn_w1=nrm(ks[9], (D_MODEL, FFN_INNER)),
        ffn_b1=jnp.zeros((1, FFN_INNER), jnp.float32),
        ffn_w2=nrm(ks[10], (FFN_INNER, D_MODEL)),
        ffn_b2=jnp.zeros((1, D_MODEL), jnp.float32),
        # FeedForward.LayerNorm
        ln2_g=jnp.ones((1, D_MODEL), jnp.float32),
        ln2_b=jnp.zeros((1, D_MODEL), jnp.float32),
    )


if __name__ == "__main__":
    key = jax.random.PRNGKey(0)
    kx, kp = jax.random.split(key)
    x = jax.random.normal(kx, (B, L, D_MODEL), jnp.float32)
    params = init_params(kp)

    # pack ONCE at init (hoisted out of the per-call jit, per review)
    w_slab, v_slab = pack_params(params)
    w_slab = jax.block_until_ready(w_slab)
    v_slab = jax.block_until_ready(v_slab)

    out = mamba_layer_forward(x, w_slab, v_slab)
    out = jax.block_until_ready(out)

    assert out.shape == (B, L, D_MODEL)
    assert bool(jnp.all(jnp.isfinite(out)))
    print("KERNEL_OK")
</pallas_src>

<mosaic_0001>
module attributes {stable_mosaic.version = 11 : i64} {
  func.func @mamba_layer_kernel(%arg0: i32, %arg1: memref<8x32xf32, #tpu.memory_space<vmem>>, %arg2: memref<320x128xbf16, #tpu.memory_space<vmem>>, %arg3: memref<32x128xf32, #tpu.memory_space<vmem>>, %arg4: memref<8x128xf32, #tpu.memory_space<vmem>>) attributes {dimension_semantics = [#tpu.dimension_semantics<parallel>], iteration_bounds = array<i64: 2>, scalar_prefetch = 0 : i64, scratch_operands = 0 : i64, tpu.core_type = #tpu.core_type<tc>, window_params = [{transform_indices = @transform_0, window_bounds = array<i64: 8, 32>}, {pipeline_mode = #tpu.pipeline_mode<synchronous>, transform_indices = @transform_1, window_bounds = array<i64: 320, 128>}, {pipeline_mode = #tpu.pipeline_mode<synchronous>, transform_indices = @transform_2, window_bounds = array<i64: 32, 128>}, {transform_indices = @transform_3, window_bounds = array<i64: 8, 128>}]} {
    %c0 = arith.constant 0 : index
    %c0_0 = arith.constant 0 : index
    %0 = vector.load %arg1[%c0, %c0_0] : memref<8x32xf32, #tpu.memory_space<vmem>>, vector<8x32xf32>
    %1 = arith.truncf %0 : vector<8x32xf32> to vector<8x32xbf16>
    %c0_1 = arith.constant 0 : index
    %c0_2 = arith.constant 0 : index
    %2 = vector.load %arg2[%c0_1, %c0_2] : memref<320x128xbf16, #tpu.memory_space<vmem>>, vector<32x128xbf16>
    %cst = arith.constant dense<0.000000e+00> : vector<8x128xf32>
    %3 = tpu.matmul %1, %2, %cst {dimension_numbers = #tpu.dot_dimension_numbers<[1], [0], [0], [1], [0, 0, 1, 1], [], []>} : vector<8x32xbf16>, vector<32x128xbf16>, vector<8x128xf32> -> vector<8x128xf32>
    %4 = vector.extract_strided_slice %3 {offsets = [0, 0], sizes = [8, 64], strides = [1, 1]} : vector<8x128xf32> to vector<8x64xf32>
    %5 = vector.extract_strided_slice %3 {offsets = [0, 64], sizes = [8, 64], strides = [1, 1]} : vector<8x128xf32> to vector<8x64xf32>
    %c24 = arith.constant 24 : index
    %c0_3 = arith.constant 0 : index
    %6 = vector.load %arg3[%c24, %c0_3] : memref<32x128xf32, #tpu.memory_space<vmem>>, vector<4x64xf32>
    %c0_4 = arith.constant 0 : index
    %c0_5 = arith.constant 0 : index
    %7 = vector.load %arg3[%c0_4, %c0_5] : memref<32x128xf32, #tpu.memory_space<vmem>>, vector<1x64xf32>
    %8 = vector.extract_strided_slice %6 {offsets = [3, 0], sizes = [1, 64], strides = [1, 1]} : vector<4x64xf32> to vector<1x64xf32>
    %9 = vector.broadcast %8 : vector<1x64xf32> to vector<8x64xf32>
    %10 = arith.mulf %4, %9 : vector<8x64xf32>
    %11 = vector.extract_strided_slice %6 {offsets = [2, 0], sizes = [1, 64], strides = [1, 1]} : vector<4x64xf32> to vector<1x64xf32>
    %cst_6 = arith.constant 0.000000e+00 : f32
    %12 = vector.broadcast %cst_6 : f32 to vector<1x64xf32>
    %13 = vector.extract_strided_slice %4 {offsets = [0, 0], sizes = [7, 64], strides = [1, 1]} : vector<8x64xf32> to vector<7x64xf32>
    %14 = tpu.concatenate %12, %13 in 0 : vector<1x64xf32>, vector<7x64xf32> -> vector<8x64xf32>
    %15 = vector.broadcast %11 : vector<1x64xf32> to vector<8x64xf32>
    %16 = arith.mulf %14, %15 : vector<8x64xf32>
    %17 = arith.addf %10, %16 : vector<8x64xf32>
    %18 = vector.extract_strided_slice %6 {offsets = [1, 0], sizes = [1, 64], strides = [1, 1]} : vector<4x64xf32> to vector<1x64xf32>
    %cst_7 = arith.constant 0.000000e+00 : f32
    %19 = vector.broadcast %cst_7 : f32 to vector<2x64xf32>
    %20 = vector.extract_strided_slice %4 {offsets = [0, 0], sizes = [6, 64], strides = [1, 1]} : vector<8x64xf32> to vector<6x64xf32>
    %21 = tpu.concatenate %19, %20 in 0 : vector<2x64xf32>, vector<6x64xf32> -> vector<8x64xf32>
    %22 = vector.broadcast %18 : vector<1x64xf32> to vector<8x64xf32>
    %23 = arith.mulf %21, %22 : vector<8x64xf32>
    %24 = arith.addf %17, %23 : vector<8x64xf32>
    %25 = vector.extract_strided_slice %6 {offsets = [0, 0], sizes = [1, 64], strides = [1, 1]} : vector<4x64xf32> to vector<1x64xf32>
    %cst_8 = arith.constant 0.000000e+00 : f32
    %26 = vector.broadcast %cst_8 : f32 to vector<3x64xf32>
    %27 = vector.extract_strided_slice %4 {offsets = [0, 0], sizes = [5, 64], strides = [1, 1]} : vector<8x64xf32> to vector<5x64xf32>
    %28 = tpu.concatenate %26, %27 in 0 : vector<3x64xf32>, vector<5x64xf32> -> vector<8x64xf32>
    %29 = vector.broadcast %25 : vector<1x64xf32> to vector<8x64xf32>
    %30 = arith.mulf %28, %29 : vector<8x64xf32>
    %31 = arith.addf %24, %30 : vector<8x64xf32>
    %32 = vector.broadcast %7 : vector<1x64xf32> to vector<8x64xf32>
    %33 = arith.addf %31, %32 : vector<8x64xf32>
    %34 = arith.negf %33 : vector<8x64xf32>
    %35 = math.exp %34 : vector<8x64xf32>
    %cst_9 = arith.constant 1.000000e+00 : f32
    %36 = vector.broadcast %cst_9 : f32 to vector<8x64xf32>
    %37 = arith.addf %36, %35 : vector<8x64xf32>
    %38 = arith.divf %36, %37 : vector<8x64xf32>
    %39 = arith.mulf %33, %38 : vector<8x64xf32>
    %40 = arith.truncf %39 : vector<8x64xf32> to vector<8x64xbf16>
    %c64 = arith.constant 64 : index
    %c0_10 = arith.constant 0 : index
    %41 = vector.load %arg2[%c64, %c0_10] : memref<320x128xbf16, #tpu.memory_space<vmem>>, vector<64x128xbf16>
    %cst_11 = arith.constant dense<0.000000e+00> : vector<8x128xf32>
    %42 = tpu.matmul %40, %41, %cst_11 {dimension_numbers = #tpu.dot_dimension_numbers<[1], [0], [0], [1], [0, 0, 1, 1], [], []>} : vector<8x64xbf16>, vector<64x128xbf16>, vector<8x128xf32> -> vector<8x128xf32>
    %43 = vector.extract_strided_slice %42 {offsets = [0, 0], sizes = [8, 64], strides = [1, 1]} : vector<8x128xf32> to vector<8x64xf32>
    %c1 = arith.constant 1 : index
    %c0_12 = arith.constant 0 : index
    %44 = vector.load %arg3[%c1, %c0_12] : memref<32x128xf32, #tpu.memory_space<vmem>>, vector<1x64xf32>
    %45 = vector.broadcast %44 : vector<1x64xf32> to vector<8x64xf32>
    %46 = arith.addf %43, %45 : vector<8x64xf32>
    %cst_13 = arith.constant 0.000000e+00 : f32
    %47 = vector.broadcast %cst_13 : f32 to vector<8x64xf32>
    %48 = arith.maximumf %46, %47 : vector<8x64xf32>
    %49 = math.absf %46 : vector<8x64xf32>
    %cst_14 = arith.constant 0.000000e+00 : f32
    %50 = vector.broadcast %cst_14 : f32 to vector<8x64xf32>
    %51 = arith.subf %50, %49 : vector<8x64xf32>
    %52 = math.exp %51 : vector<8x64xf32>
    %cst_15 = arith.constant 1.000000e+00 : f32
    %53 = vector.broadcast %cst_15 : f32 to vector<8x64xf32>
    %54 = arith.addf %53, %52 : vector<8x64xf32>
    %55 = math.log %54 : vector<8x64xf32>
    %56 = arith.addf %48, %55 : vector<8x64xf32>
    %57 = vector.extract_strided_slice %42 {offsets = [0, 64], sizes = [8, 16], strides = [1, 1]} : vector<8x128xf32> to vector<8x16xf32>
    %58 = tpu.transpose %57, [1, 0] : vector<8x16xf32> -> vector<16x8xf32>
    %c16 = arith.constant 16 : index
    %c0_16 = arith.constant 0 : index
    %59 = vector.load %arg3[%c16, %c0_16] : memref<32x128xf32, #tpu.memory_space<vmem>>, vector<8x64xf32>
    %60 = math.exp %59 : vector<8x64xf32>
    %cst_17 = arith.constant 0.000000e+00 : f32
    %61 = vector.broadcast %cst_17 : f32 to vector<8x64xf32>
    %62 = arith.subf %61, %60 : vector<8x64xf32>
    %63 = arith.mulf %56, %39 : vector<8x64xf32>
    %64 = tpu.iota {dimensions = array<i32: 0>} : vector<8x64xi32>
    %cst_18 = arith.constant 0.000000e+00 : f32
    %65 = vector.broadcast %cst_18 : f32 to vector<8x64xf32>
    %cst_19 = arith.constant 0.000000e+00 : f32
    %66 = vector.broadcast %cst_19 : f32 to vector<8x64xf32>
    %67 = vector.extract_strided_slice %56 {offsets = [0, 0], sizes = [1, 64], strides = [1, 1]} : vector<8x64xf32> to vector<1x64xf32>
    %68 = vector.broadcast %67 : vector<1x64xf32> to vector<8x64xf32>
    %69 = arith.mulf %68, %62 : vector<8x64xf32>
    %70 = math.exp %69 : vector<8x64xf32>
    %71 = vector.extract_strided_slice %58 {offsets = [0, 0], sizes = [8, 1], strides = [1, 1]} : vector<16x8xf32> to vector<8x1xf32>
    %72 = vector.extract_strided_slice %58 {offsets = [8, 0], sizes = [8, 1], strides = [1, 1]} : vector<16x8xf32> to vector<8x1xf32>
    %73 = arith.mulf %70, %65 : vector<8x64xf32>
    %74 = vector.extract_strided_slice %63 {offsets = [0, 0], sizes = [1, 64], strides = [1, 1]} : vector<8x64xf32> to vector<1x64xf32>
    %75 = vector.broadcast %74 : vector<1x64xf32> to vector<8x64xf32>
    %76 = vector.broadcast %71 : vector<8x1xf32> to vector<8x64xf32>
    %77 = arith.mulf %75, %76 : vector<8x64xf32>
    %78 = arith.addf %73, %77 : vector<8x64xf32>
    %79 = vector.broadcast %72 : vector<8x1xf32> to vector<8x64xf32>
    %80 = arith.mulf %78, %79 : vector<8x64xf32>
    %cst_20 = arith.constant dense<0.000000e+00> : vector<64xf32>
    %81 = vector.multi_reduction <add>, %80, %cst_20 [0] : vector<8x64xf32> to vector<64xf32>
    %82 = vector.shape_cast %81 : vector<64xf32> to vector<1x64xf32>
    %c0_i32 = arith.constant 0 : i32
    %83 = vector.broadcast %c0_i32 : i32 to vector<8x64xi32>
    %84 = arith.cmpi eq, %64, %83 : vector<8x64xi32>
    %85 = vector.shape_cast %82 : vector<1x64xf32> to vector<1x64xf32>
    %86 = vector.broadcast %85 : vector<1x64xf32> to vector<8x64xf32>
    %87 = arith.select %84, %86, %66 : vector<8x64xi1>, vector<8x64xf32>
    %88 = vector.extract_strided_slice %56 {offsets = [1, 0], sizes = [1, 64], strides = [1, 1]} : vector<8x64xf32> to vector<1x64xf32>
    %89 = vector.broadcast %88 : vector<1x64xf32> to vector<8x64xf32>
    %90 = arith.mulf %89, %62 : vector<8x64xf32>
    %91 = math.exp %90 : vector<8x64xf32>
    %92 = vector.extract_strided_slice %58 {offsets = [0, 1], sizes = [8, 1], strides = [1, 1]} : vector<16x8xf32> to vector<8x1xf32>
    %93 = vector.extract_strided_slice %58 {offsets = [8, 1], sizes = [8, 1], strides = [1, 1]} : vector<16x8xf32> to vector<8x1xf32>
    %94 = arith.mulf %91, %78 : vector<8x64xf32>
    %95 = vector.extract_strided_slice %63 {offsets = [1, 0], sizes = [1, 64], strides = [1, 1]} : vector<8x64xf32> to vector<1x64xf32>
    %96 = vector.broadcast %95 : vector<1x64xf32> to vector<8x64xf32>
    %97 = vector.broadcast %92 : vector<8x1xf32> to vector<8x64xf32>
    %98 = arith.mulf %96, %97 : vector<8x64xf32>
    %99 = arith.addf %94, %98 : vector<8x64xf32>
    %100 = vector.broadcast %93 : vector<8x1xf32> to vector<8x64xf32>
    %101 = arith.mulf %99, %100 : vector<8x64xf32>
    %cst_21 = arith.constant dense<0.000000e+00> : vector<64xf32>
    %102 = vector.multi_reduction <add>, %101, %cst_21 [0] : vector<8x64xf32> to vector<64xf32>
    %103 = vector.shape_cast %102 : vector<64xf32> to vector<1x64xf32>
    %c1_i32 = arith.constant 1 : i32
    %104 = vector.broadcast %c1_i32 : i32 to vector<8x64xi32>
    %105 = arith.cmpi eq, %64, %104 : vector<8x64xi32>
    %106 = vector.shape_cast %103 : vector<1x64xf32> to vector<1x64xf32>
    %107 = vector.broadcast %106 : vector<1x64xf32> to vector<8x64xf32>
    %108 = arith.select %105, %107, %87 : vector<8x64xi1>, vector<8x64xf32>
    %109 = vector.extract_strided_slice %56 {offsets = [2, 0], sizes = [1, 64], strides = [1, 1]} : vector<8x64xf32> to vector<1x64xf32>
    %110 = vector.broadcast %109 : vector<1x64xf32> to vector<8x64xf32>
    %111 = arith.mulf %110, %62 : vector<8x64xf32>
    %112 = math.exp %111 : vector<8x64xf32>
    %113 = vector.extract_strided_slice %58 {offsets = [0, 2], sizes = [8, 1], strides = [1, 1]} : vector<16x8xf32> to vector<8x1xf32>
    %114 = vector.extract_strided_slice %58 {offsets = [8, 2], sizes = [8, 1], strides = [1, 1]} : vector<16x8xf32> to vector<8x1xf32>
    %115 = arith.mulf %112, %99 : vector<8x64xf32>
    %116 = vector.extract_strided_slice %63 {offsets = [2, 0], sizes = [1, 64], strides = [1, 1]} : vector<8x64xf32> to vector<1x64xf32>
    %117 = vector.broadcast %116 : vector<1x64xf32> to vector<8x64xf32>
    %118 = vector.broadcast %113 : vector<8x1xf32> to vector<8x64xf32>
    %119 = arith.mulf %117, %118 : vector<8x64xf32>
    %120 = arith.addf %115, %119 : vector<8x64xf32>
    %121 = vector.broadcast %114 : vector<8x1xf32> to vector<8x64xf32>
    %122 = arith.mulf %120, %121 : vector<8x64xf32>
    %cst_22 = arith.constant dense<0.000000e+00> : vector<64xf32>
    %123 = vector.multi_reduction <add>, %122, %cst_22 [0] : vector<8x64xf32> to vector<64xf32>
    %124 = vector.shape_cast %123 : vector<64xf32> to vector<1x64xf32>
    %c2_i32 = arith.constant 2 : i32
    %125 = vector.broadcast %c2_i32 : i32 to vector<8x64xi32>
    %126 = arith.cmpi eq, %64, %125 : vector<8x64xi32>
    %127 = vector.shape_cast %124 : vector<1x64xf32> to vector<1x64xf32>
    %128 = vector.broadcast %127 : vector<1x64xf32> to vector<8x64xf32>
    %129 = arith.select %126, %128, %108 : vector<8x64xi1>, vector<8x64xf32>
    %130 = vector.extract_strided_slice %56 {offsets = [3, 0], sizes = [1, 64], strides = [1, 1]} : vector<8x64xf32> to vector<1x64xf32>
    %131 = vector.broadcast %130 : vector<1x64xf32> to vector<8x64xf32>
    %132 = arith.mulf %131, %62 : vector<8x64xf32>
    %133 = math.exp %132 : vector<8x64xf32>
    %134 = vector.extract_strided_slice %58 {offsets = [0, 3], sizes = [8, 1], strides = [1, 1]} : vector<16x8xf32> to vector<8x1xf32>
    %135 = vector.extract_strided_slice %58 {offsets = [8, 3], sizes = [8, 1], strides = [1, 1]} : vector<16x8xf32> to vector<8x1xf32>
    %136 = arith.mulf %133, %120 : vector<8x64xf32>
    %137 = vector.extract_strided_slice %63 {offsets = [3, 0], sizes = [1, 64], strides = [1, 1]} : vector<8x64xf32> to vector<1x64xf32>
    %138 = vector.broadcast %137 : vector<1x64xf32> to vector<8x64xf32>
    %139 = vector.broadcast %134 : vector<8x1xf32> to vector<8x64xf32>
    %140 = arith.mulf %138, %139 : vector<8x64xf32>
    %141 = arith.addf %136, %140 : vector<8x64xf32>
    %142 = vector.broadcast %135 : vector<8x1xf32> to vector<8x64xf32>
    %143 = arith.mulf %141, %142 : vector<8x64xf32>
    %cst_23 = arith.constant dense<0.000000e+00> : vector<64xf32>
    %144 = vector.multi_reduction <add>, %143, %cst_23 [0] : vector<8x64xf32> to vector<64xf32>
    %145 = vector.shape_cast %144 : vector<64xf32> to vector<1x64xf32>
    %c3_i32 = arith.constant 3 : i32
    %146 = vector.broadcast %c3_i32 : i32 to vector<8x64xi32>
    %147 = arith.cmpi eq, %64, %146 : vector<8x64xi32>
    %148 = vector.shape_cast %145 : vector<1x64xf32> to vector<1x64xf32>
    %149 = vector.broadcast %148 : vector<1x64xf32> to vector<8x64xf32>
    %150 = arith.select %147, %149, %129 : vector<8x64xi1>, vector<8x64xf32>
    %151 = vector.extract_strided_slice %56 {offsets = [4, 0], sizes = [1, 64], strides = [1, 1]} : vector<8x64xf32> to vector<1x64xf32>
    %152 = vector.broadcast %151 : vector<1x64xf32> to vector<8x64xf32>
    %153 = arith.mulf %152, %62 : vector<8x64xf32>
    %154 = math.exp %153 : vector<8x64xf32>
    %155 = vector.extract_strided_slice %58 {offsets = [0, 4], sizes = [8, 1], strides = [1, 1]} : vector<16x8xf32> to vector<8x1xf32>
    %156 = vector.extract_strided_slice %58 {offsets = [8, 4], sizes = [8, 1], strides = [1, 1]} : vector<16x8xf32> to vector<8x1xf32>
    %157 = arith.mulf %154, %141 : vector<8x64xf32>
    %158 = vector.extract_strided_slice %63 {offsets = [4, 0], sizes = [1, 64], strides = [1, 1]} : vector<8x64xf32> to vector<1x64xf32>
    %159 = vector.broadcast %158 : vector<1x64xf32> to vector<8x64xf32>
    %160 = vector.broadcast %155 : vector<8x1xf32> to vector<8x64xf32>
    %161 = arith.mulf %159, %160 : vector<8x64xf32>
    %162 = arith.addf %157, %161 : vector<8x64xf32>
    %163 = vector.broadcast %156 : vector<8x1xf32> to vector<8x64xf32>
    %164 = arith.mulf %162, %163 : vector<8x64xf32>
    %cst_24 = arith.constant dense<0.000000e+00> : vector<64xf32>
    %165 = vector.multi_reduction <add>, %164, %cst_24 [0] : vector<8x64xf32> to vector<64xf32>
    %166 = vector.shape_cast %165 : vector<64xf32> to vector<1x64xf32>
    %c4_i32 = arith.constant 4 : i32
    %167 = vector.broadcast %c4_i32 : i32 to vector<8x64xi32>
    %168 = arith.cmpi eq, %64, %167 : vector<8x64xi32>
    %169 = vector.shape_cast %166 : vector<1x64xf32> to vector<1x64xf32>
    %170 = vector.broadcast %169 : vector<1x64xf32> to vector<8x64xf32>
    %171 = arith.select %168, %170, %150 : vector<8x64xi1>, vector<8x64xf32>
    %172 = vector.extract_strided_slice %56 {offsets = [5, 0], sizes = [1, 64], strides = [1, 1]} : vector<8x64xf32> to vector<1x64xf32>
    %173 = vector.broadcast %172 : vector<1x64xf32> to vector<8x64xf32>
    %174 = arith.mulf %173, %62 : vector<8x64xf32>
    %175 = math.exp %174 : vector<8x64xf32>
    %176 = vector.extract_strided_slice %58 {offsets = [0, 5], sizes = [8, 1], strides = [1, 1]} : vector<16x8xf32> to vector<8x1xf32>
    %177 = vector.extract_strided_slice %58 {offsets = [8, 5], sizes = [8, 1], strides = [1, 1]} : vector<16x8xf32> to vector<8x1xf32>
    %178 = arith.mulf %175, %162 : vector<8x64xf32>
    %179 = vector.extract_strided_slice %63 {offsets = [5, 0], sizes = [1, 64], strides = [1, 1]} : vector<8x64xf32> to vector<1x64xf32>
    %180 = vector.broadcast %179 : vector<1x64xf32> to vector<8x64xf32>
    %181 = vector.broadcast %176 : vector<8x1xf32> to vector<8x64xf32>
    %182 = arith.mulf %180, %181 : vector<8x64xf32>
    %183 = arith.addf %178, %182 : vector<8x64xf32>
    %184 = vector.broadcast %177 : vector<8x1xf32> to vector<8x64xf32>
    %185 = arith.mulf %183, %184 : vector<8x64xf32>
    %cst_25 = arith.constant dense<0.000000e+00> : vector<64xf32>
    %186 = vector.multi_reduction <add>, %185, %cst_25 [0] : vector<8x64xf32> to vector<64xf32>
    %187 = vector.shape_cast %186 : vector<64xf32> to vector<1x64xf32>
    %c5_i32 = arith.constant 5 : i32
    %188 = vector.broadcast %c5_i32 : i32 to vector<8x64xi32>
    %189 = arith.cmpi eq, %64, %188 : vector<8x64xi32>
    %190 = vector.shape_cast %187 : vector<1x64xf32> to vector<1x64xf32>
    %191 = vector.broadcast %190 : vector<1x64xf32> to vector<8x64xf32>
    %192 = arith.select %189, %191, %171 : vector<8x64xi1>, vector<8x64xf32>
    %193 = vector.extract_strided_slice %56 {offsets = [6, 0], sizes = [1, 64], strides = [1, 1]} : vector<8x64xf32> to vector<1x64xf32>
    %194 = vector.broadcast %193 : vector<1x64xf32> to vector<8x64xf32>
    %195 = arith.mulf %194, %62 : vector<8x64xf32>
    %196 = math.exp %195 : vector<8x64xf32>
    %197 = vector.extract_strided_slice %58 {offsets = [0, 6], sizes = [8, 1], strides = [1, 1]} : vector<16x8xf32> to vector<8x1xf32>
    %198 = vector.extract_strided_slice %58 {offsets = [8, 6], sizes = [8, 1], strides = [1, 1]} : vector<16x8xf32> to vector<8x1xf32>
    %199 = arith.mulf %196, %183 : vector<8x64xf32>
    %200 = vector.extract_strided_slice %63 {offsets = [6, 0], sizes = [1, 64], strides = [1, 1]} : vector<8x64xf32> to vector<1x64xf32>
    %201 = vector.broadcast %200 : vector<1x64xf32> to vector<8x64xf32>
    %202 = vector.broadcast %197 : vector<8x1xf32> to vector<8x64xf32>
    %203 = arith.mulf %201, %202 : vector<8x64xf32>
    %204 = arith.addf %199, %203 : vector<8x64xf32>
    %205 = vector.broadcast %198 : vector<8x1xf32> to vector<8x64xf32>
    %206 = arith.mulf %204, %205 : vector<8x64xf32>
    %cst_26 = arith.constant dense<0.000000e+00> : vector<64xf32>
    %207 = vector.multi_reduction <add>, %206, %cst_26 [0] : vector<8x64xf32> to vector<64xf32>
    %208 = vector.shape_cast %207 : vector<64xf32> to vector<1x64xf32>
    %c6_i32 = arith.constant 6 : i32
    %209 = vector.broadcast %c6_i32 : i32 to vector<8x64xi32>
    %210 = arith.cmpi eq, %64, %209 : vector<8x64xi32>
    %211 = vector.shape_cast %208 : vector<1x64xf32> to vector<1x64xf32>
    %212 = vector.broadcast %211 : vector<1x64xf32> to vector<8x64xf32>
    %213 = arith.select %210, %212, %192 : vector<8x64xi1>, vector<8x64xf32>
    %214 = vector.extract_strided_slice %56 {offsets = [7, 0], sizes = [1, 64], strides = [1, 1]} : vector<8x64xf32> to vector<1x64xf32>
    %215 = vector.broadcast %214 : vector<1x64xf32> to vector<8x64xf32>
    %216 = arith.mulf %215, %62 : vector<8x64xf32>
    %217 = math.exp %216 : vector<8x64xf32>
    %218 = vector.extract_strided_slice %58 {offsets = [0, 7], sizes = [8, 1], strides = [1, 1]} : vector<16x8xf32> to vector<8x1xf32>
    %219 = vector.extract_strided_slice %58 {offsets = [8, 7], sizes = [8, 1], strides = [1, 1]} : vector<16x8xf32> to vector<8x1xf32>
    %220 = arith.mulf %217, %204 : vector<8x64xf32>
    %221 = vector.extract_strided_slice %63 {offsets = [7, 0], sizes = [1, 64], strides = [1, 1]} : vector<8x64xf32> to vector<1x64xf32>
    %222 = vector.broadcast %221 : vector<1x64xf32> to vector<8x64xf32>
    %223 = vector.broadcast %218 : vector<8x1xf32> to vector<8x64xf32>
    %224 = arith.mulf %222, %223 : vector<8x64xf32>
    %225 = arith.addf %220, %224 : vector<8x64xf32>
    %226 = vector.broadcast %219 : vector<8x1xf32> to vector<8x64xf32>
    %227 = arith.mulf %225, %226 : vector<8x64xf32>
    %cst_27 = arith.constant dense<0.000000e+00> : vector<64xf32>
    %228 = vector.multi_reduction <add>, %227, %cst_27 [0] : vector<8x64xf32> to vector<64xf32>
    %229 = vector.shape_cast %228 : vector<64xf32> to vector<1x64xf32>
    %c7_i32 = arith.constant 7 : i32
    %230 = vector.broadcast %c7_i32 : i32 to vector<8x64xi32>
    %231 = arith.cmpi eq, %64, %230 : vector<8x64xi32>
    %232 = vector.shape_cast %229 : vector<1x64xf32> to vector<1x64xf32>
    %233 = vector.broadcast %232 : vector<1x64xf32> to vector<8x64xf32>
    %234 = arith.select %231, %233, %213 : vector<8x64xi1>, vector<8x64xf32>
    %c2 = arith.constant 2 : index
    %c0_28 = arith.constant 0 : index
    %235 = vector.load %arg3[%c2, %c0_28] : memref<32x128xf32, #tpu.memory_space<vmem>>, vector<1x64xf32>
    %236 = vector.broadcast %235 : vector<1x64xf32> to vector<8x64xf32>
    %237 = arith.mulf %39, %236 : vector<8x64xf32>
    %238 = arith.addf %234, %237 : vector<8x64xf32>
    %239 = arith.negf %5 : vector<8x64xf32>
    %240 = math.exp %239 : vector<8x64xf32>
    %cst_29 = arith.constant 1.000000e+00 : f32
    %241 = vector.broadcast %cst_29 : f32 to vector<8x64xf32>
    %242 = arith.addf %241, %240 : vector<8x64xf32>
    %243 = arith.divf %241, %242 : vector<8x64xf32>
    %244 = arith.mulf %5, %243 : vector<8x64xf32>
    %245 = arith.mulf %238, %244 : vector<8x64xf32>
    %246 = arith.truncf %245 : vector<8x64xf32> to vector<8x64xbf16>
    %c128 = arith.constant 128 : index
    %c0_30 = arith.constant 0 : index
    %247 = vector.load %arg2[%c128, %c0_30] : memref<320x128xbf16, #tpu.memory_space<vmem>>, vector<64x32xbf16>
    %cst_31 = arith.constant dense<0.000000e+00> : vector<8x32xf32>
    %248 = tpu.matmul %246, %247, %cst_31 {dimension_numbers = #tpu.dot_dimension_numbers<[1], [0], [0], [1], [0, 0, 1, 1], [], []>} : vector<8x64xbf16>, vector<64x32xbf16>, vector<8x32xf32> -> vector<8x32xf32>
    %249 = arith.addf %248, %0 : vector<8x32xf32>
    %c3 = arith.constant 3 : index
    %c0_32 = arith.constant 0 : index
    %250 = vector.load %arg3[%c3, %c0_32] : memref<32x128xf32, #tpu.memory_space<vmem>>, vector<1x32xf32>
    %c4 = arith.constant 4 : index
    %c0_33 = arith.constant 0 : index
    %251 = vector.load %arg3[%c4, %c0_33] : memref<32x128xf32, #tpu.memory_space<vmem>>, vector<1x32xf32>
    %cst_34 = arith.constant dense<0.000000e+00> : vector<8xf32>
    %252 = vector.multi_reduction <add>, %249, %cst_34 [1] : vector<8x32xf32> to vector<8xf32>
    %253 = vector.shape_cast %252 : vector<8xf32> to vector<8x1xf32>
    %cst_35 = arith.constant 3.200000e+01 : f32
    %254 = vector.broadcast %cst_35 : f32 to vector<8x1xf32>
    %255 = arith.divf %253, %254 : vector<8x1xf32>
    %256 = vector.broadcast %255 : vector<8x1xf32> to vector<8x32xf32>
    %257 = arith.subf %249, %256 : vector<8x32xf32>
    %258 = arith.mulf %257, %257 : vector<8x32xf32>
    %cst_36 = arith.constant dense<0.000000e+00> : vector<8xf32>
    %259 = vector.multi_reduction <add>, %258, %cst_36 [1] : vector<8x32xf32> to vector<8xf32>
    %260 = vector.shape_cast %259 : vector<8xf32> to vector<8x1xf32>
    %cst_37 = arith.constant 3.200000e+01 : f32
    %261 = vector.broadcast %cst_37 : f32 to vector<8x1xf32>
    %262 = arith.divf %260, %261 : vector<8x1xf32>
    %263 = vector.broadcast %255 : vector<8x1xf32> to vector<8x32xf32>
    %264 = arith.subf %249, %263 : vector<8x32xf32>
    %cst_38 = arith.constant 9.99999996E-13 : f32
    %265 = vector.broadcast %cst_38 : f32 to vector<8x1xf32>
    %266 = arith.addf %262, %265 : vector<8x1xf32>
    %267 = math.rsqrt %266 : vector<8x1xf32>
    %268 = vector.broadcast %267 : vector<8x1xf32> to vector<8x32xf32>
    %269 = arith.mulf %264, %268 : vector<8x32xf32>
    %270 = vector.broadcast %250 : vector<1x32xf32> to vector<8x32xf32>
    %271 = arith.mulf %269, %270 : vector<8x32xf32>
    %272 = vector.broadcast %251 : vector<1x32xf32> to vector<8x32xf32>
    %273 = arith.addf %271, %272 : vector<8x32xf32>
    %274 = arith.truncf %273 : vector<8x32xf32> to vector<8x32xbf16>
    %c32 = arith.constant 32 : index
    %c0_39 = arith.constant 0 : index
    %275 = vector.load %arg2[%c32, %c0_39] : memref<320x128xbf16, #tpu.memory_space<vmem>>, vector<32x128xbf16>
    %cst_40 = arith.constant dense<0.000000e+00> : vector<8x128xf32>
    %276 = tpu.matmul %274, %275, %cst_40 {dimension_numbers = #tpu.dot_dimension_numbers<[1], [0], [0], [1], [0, 0, 1, 1], [], []>} : vector<8x32xbf16>, vector<32x128xbf16>, vector<8x128xf32> -> vector<8x128xf32>
    %c5 = arith.constant 5 : index
    %c0_41 = arith.constant 0 : index
    %277 = vector.load %arg3[%c5, %c0_41] : memref<32x128xf32, #tpu.memory_space<vmem>>, vector<1x128xf32>
    %278 = vector.broadcast %277 : vector<1x128xf32> to vector<8x128xf32>
    %279 = arith.addf %276, %278 : vector<8x128xf32>
    %cst_42 = arith.constant 5.000000e-01 : f32
    %280 = vector.broadcast %cst_42 : f32 to vector<8x128xf32>
    %281 = arith.mulf %280, %279 : vector<8x128xf32>
    %cst_43 = arith.constant 0.707106769 : f32
    %282 = vector.broadcast %cst_43 : f32 to vector<8x128xf32>
    %283 = arith.mulf %279, %282 : vector<8x128xf32>
    %284 = math.absf %283 : vector<8x128xf32>
    %cst_44 = arith.constant 0.327591091 : f32
    %285 = vector.broadcast %cst_44 : f32 to vector<8x128xf32>
    %286 = arith.mulf %285, %284 : vector<8x128xf32>
    %cst_45 = arith.constant 1.000000e+00 : f32
    %287 = vector.broadcast %cst_45 : f32 to vector<8x128xf32>
    %288 = arith.addf %287, %286 : vector<8x128xf32>
    %cst_46 = arith.constant 1.000000e+00 : f32
    %289 = vector.broadcast %cst_46 : f32 to vector<8x128xf32>
    %290 = arith.divf %289, %288 : vector<8x128xf32>
    %cst_47 = arith.constant 1.06140542 : f32
    %291 = vector.broadcast %cst_47 : f32 to vector<8x128xf32>
    %292 = arith.mulf %290, %291 : vector<8x128xf32>
    %cst_48 = arith.constant -1.45315206 : f32
    %293 = vector.broadcast %cst_48 : f32 to vector<8x128xf32>
    %294 = arith.addf %293, %292 : vector<8x128xf32>
    %295 = arith.mulf %290, %294 : vector<8x128xf32>
    %cst_49 = arith.constant 1.42141378 : f32
    %296 = vector.broadcast %cst_49 : f32 to vector<8x128xf32>
    %297 = arith.addf %296, %295 : vector<8x128xf32>
    %298 = arith.mulf %290, %297 : vector<8x128xf32>
    %cst_50 = arith.constant -0.284496725 : f32
    %299 = vector.broadcast %cst_50 : f32 to vector<8x128xf32>
    %300 = arith.addf %299, %298 : vector<8x128xf32>
    %301 = arith.mulf %290, %300 : vector<8x128xf32>
    %cst_51 = arith.constant 0.254829586 : f32
    %302 = vector.broadcast %cst_51 : f32 to vector<8x128xf32>
    %303 = arith.addf %302, %301 : vector<8x128xf32>
    %304 = arith.mulf %290, %303 : vector<8x128xf32>
    %cst_52 = arith.constant 0.000000e+00 : f32
    %305 = vector.broadcast %cst_52 : f32 to vector<8x128xf32>
    %306 = arith.subf %305, %284 : vector<8x128xf32>
    %307 = arith.mulf %306, %284 : vector<8x128xf32>
    %308 = math.exp %307 : vector<8x128xf32>
    %309 = arith.mulf %304, %308 : vector<8x128xf32>
    %cst_53 = arith.constant 1.000000e+00 : f32
    %310 = vector.broadcast %cst_53 : f32 to vector<8x128xf32>
    %311 = arith.subf %310, %309 : vector<8x128xf32>
    %cst_54 = arith.constant 0.000000e+00 : f32
    %312 = vector.broadcast %cst_54 : f32 to vector<8x128xf32>
    %313 = arith.cmpf oge, %283, %312 : vector<8x128xf32>
    %cst_55 = arith.constant 0.000000e+00 : f32
    %314 = vector.broadcast %cst_55 : f32 to vector<8x128xf32>
    %315 = arith.subf %314, %311 : vector<8x128xf32>
    %316 = arith.select %313, %311, %315 : vector<8x128xi1>, vector<8x128xf32>
    %cst_56 = arith.constant 1.000000e+00 : f32
    %317 = vector.broadcast %cst_56 : f32 to vector<8x128xf32>
    %318 = arith.addf %317, %316 : vector<8x128xf32>
    %319 = arith.mulf %281, %318 : vector<8x128xf32>
    %320 = arith.truncf %319 : vector<8x128xf32> to vector<8x128xbf16>
    %c192 = arith.constant 192 : index
    %c0_57 = arith.constant 0 : index
    %321 = vector.load %arg2[%c192, %c0_57] : memref<320x128xbf16, #tpu.memory_space<vmem>>, vector<128x32xbf16>
    %cst_58 = arith.constant dense<0.000000e+00> : vector<8x32xf32>
    %322 = tpu.matmul %320, %321, %cst_58 {dimension_numbers = #tpu.dot_dimension_numbers<[1], [0], [0], [1], [0, 0, 1, 1], [], []>} : vector<8x128xbf16>, vector<128x32xbf16>, vector<8x32xf32> -> vector<8x32xf32>
    %c6 = arith.constant 6 : index
    %c0_59 = arith.constant 0 : index
    %323 = vector.load %arg3[%c6, %c0_59] : memref<32x128xf32, #tpu.memory_space<vmem>>, vector<1x32xf32>
    %324 = vector.broadcast %323 : vector<1x32xf32> to vector<8x32xf32>
    %325 = arith.addf %322, %324 : vector<8x32xf32>
    %326 = arith.addf %325, %273 : vector<8x32xf32>
    %c7 = arith.constant 7 : index
    %c0_60 = arith.constant 0 : index
    %327 = vector.load %arg3[%c7, %c0_60] : memref<32x128xf32, #tpu.memory_space<vmem>>, vector<1x32xf32>
    %c8 = arith.constant 8 : index
    %c0_61 = arith.constant 0 : index
    %328 = vector.load %arg3[%c8, %c0_61] : memref<32x128xf32, #tpu.memory_space<vmem>>, vector<1x32xf32>
    %cst_62 = arith.constant dense<0.000000e+00> : vector<8xf32>
    %329 = vector.multi_reduction <add>, %326, %cst_62 [1] : vector<8x32xf32> to vector<8xf32>
    %330 = vector.shape_cast %329 : vector<8xf32> to vector<8x1xf32>
    %cst_63 = arith.constant 3.200000e+01 : f32
    %331 = vector.broadcast %cst_63 : f32 to vector<8x1xf32>
    %332 = arith.divf %330, %331 : vector<8x1xf32>
    %333 = vector.broadcast %332 : vector<8x1xf32> to vector<8x32xf32>
    %334 = arith.subf %326, %333 : vector<8x32xf32>
    %335 = arith.mulf %334, %334 : vector<8x32xf32>
    %cst_64 = arith.constant dense<0.000000e+00> : vector<8xf32>
    %336 = vector.multi_reduction <add>, %335, %cst_64 [1] : vector<8x32xf32> to vector<8xf32>
    %337 = vector.shape_cast %336 : vector<8xf32> to vector<8x1xf32>
    %cst_65 = arith.constant 3.200000e+01 : f32
    %338 = vector.broadcast %cst_65 : f32 to vector<8x1xf32>
    %339 = arith.divf %337, %338 : vector<8x1xf32>
    %340 = vector.broadcast %332 : vector<8x1xf32> to vector<8x32xf32>
    %341 = arith.subf %326, %340 : vector<8x32xf32>
    %cst_66 = arith.constant 9.99999996E-13 : f32
    %342 = vector.broadcast %cst_66 : f32 to vector<8x1xf32>
    %343 = arith.addf %339, %342 : vector<8x1xf32>
    %344 = math.rsqrt %343 : vector<8x1xf32>
    %345 = vector.broadcast %344 : vector<8x1xf32> to vector<8x32xf32>
    %346 = arith.mulf %341, %345 : vector<8x32xf32>
    %347 = vector.broadcast %327 : vector<1x32xf32> to vector<8x32xf32>
    %348 = arith.mulf %346, %347 : vector<8x32xf32>
    %349 = vector.broadcast %328 : vector<1x32xf32> to vector<8x32xf32>
    %350 = arith.addf %348, %349 : vector<8x32xf32>
    %cst_67 = arith.constant 0.000000e+00 : f32
    %351 = vector.broadcast %cst_67 : f32 to vector<8x96xf32>
    %352 = tpu.concatenate %350, %351 in 1 : vector<8x32xf32>, vector<8x96xf32> -> vector<8x128xf32>
    %c0_68 = arith.constant 0 : index
    %c0_69 = arith.constant 0 : index
    %353 = vector.load %arg4[%c0_68, %c0_69] : memref<8x128xf32, #tpu.memory_space<vmem>>, vector<8x128xf32>
    tpu.vector_store %arg4[%c0_68, %c0_69], %352 {strides = array<i32>} : memref<8x128xf32, #tpu.memory_space<vmem>>, vector<8x128xf32>,
    return
  }
  func.func @transform_0(%arg0: i32) -> (i32, i32) {
    %c0_i32 = arith.constant 0 : i32
    %c0_i32_0 = arith.constant 0 : i32
    return %arg0, %c0_i32 : i32, i32
  }
  func.func @transform_1(%arg0: i32) -> (i32, i32) {
    %c0_i32 = arith.constant 0 : i32
    %c0_i32_0 = arith.constant 0 : i32
    %c0_i32_1 = arith.constant 0 : i32
    return %c0_i32, %c0_i32_0 : i32, i32
  }
  func.func @transform_2(%arg0: i32) -> (i32, i32) {
    %c0_i32 = arith.constant 0 : i32
    %c0_i32_0 = arith.constant 0 : i32
    %c0_i32_1 = arith.constant 0 : i32
    return %c0_i32, %c0_i32_0 : i32, i32
  }
  func.func @transform_3(%arg0: i32) -> (i32, i32) {
    %c0_i32 = arith.constant 0 : i32
    %c0_i32_0 = arith.constant 0 : i32
    return %arg0, %c0_i32 : i32, i32
  }
}

</mosaic_0001>

<bundles_post_ra>
// kernel: mamba_layer_forward.1
= control target key start
LH: loop header
LB: loop body
LE: loop exit
PB: predicated region body
PF: predicated region fallthrough
CT: control target
= control target key end

     0   :  { %8 = vsyncpa [#allocation3], 0  ;;  %s1918_s0 = inlined_call_operand.hbm [shape: f32[16,32], index: 0, kind: input, shape index: {}]   ;;  %s1919_s1 = inlined_call_operand.hbm [shape: bf16[320,128], index: 1, kind: input, shape index: {}]   ;;  %s1920_s2 = inlined_call_operand.hbm [shape: f32[32,128], index: 2, kind: input, shape index: {}]   ;;  %s1921_s3 = inlined_call_operand.vmem [shape: f32[16,128], index: 3, kind: output, shape index: {}]  }
   0x1   :  { %10 = vsyncpa [#allocation3 + $0x1], 0 }
   0x2   :  { %11 = vsyncpa [#allocation5], 0  ;;  %s1604_s12 = smov 0   ;;  %s1606_s13 = smov 0  }
   0x3   :  { %s1608_s14 = smov 0   ;;  %s1610_s15 = smov 0  }
   0x4 LB: > { %s1623_s16 = sadd.s32 4294967295, %s1564_s15   ;;  %p37_p0 = scmp.ne.s32.totalorder %s1556_s13, %s1552_s12  ;;  %s1564_s15 = sphi %s1610_s15, %s1936_s15   ;;  %s1560_s14 = sphi %s1608_s14, %s1935_s14   ;;  %s1556_s13 = sphi %s1606_s13, %s1934_s13   ;;  %s1552_s12 = sphi %s1604_s12, %s1933_s12  }
   0x5   : > { %p1922_p1 = scmp.eq.s32.totalorder %s1623_s16, 0  ;;  %p1157_p2 = scmp.ge.s32.totalorder %s1564_s15, 1 }
   0x6   : > { %p116_p3 = scmp.lt.s32.totalorder %s1564_s15, 3  ;;  %s1566_s19 = smov [#allocation4]  }
   0x7   : > { %p1631_p4 = por %p1922_p1, %p37_p0  ;;  %s128_s20 = sshll.u32 %s1566_s19, 4  ;;  %s129_s20 = int_to_ptr.vmem [resolvable:$true] %s128_s20 }
   0x8   : > { %p1635_p5 = pnand %p1157_p2, %p116_p3  ;;  %s1567_s22 = smov [#allocation6]  }
   0x9   : > { %s1925_s17 = scalar_select %p1631_p4, 1, 0 }
   0xa   : > { %s1926_s18 = scalar_select %p1635_p5, 1, 0 }
   0xb   : > { %p1300_p6 = pneg %p1635_p5  ;;  %s141_s23 = sshll.u32 %s1567_s22, 4  ;;  %s1647_s23 = int_to_ptr.vmem [resolvable:$true] %s141_s23 }
   0xc   : > { %s1440_s26 = scalar_lea.hbm %s1919_s1, 2560 }
   0xd   : > { %p1643_p7 = pnand %p1300_p6, %p1922_p1  ;;  %p1441_p8 = scmp.ne.s32.totalorder %s1919_s1, %s1440_s26 }
   0xe   : > { %p1447_p12 = scmp.lt.u32.totalorder %s1440_s26, %s1919_s1 }
   0xf   : > { %p1442_p9 = pneg %p1643_p7 }
  0x11   : > { %p1443_p10 = pnand %p1442_p9, %p1441_p8 }
  0x13   : > { %p1444_p11 = pneg %p1443_p10 }
  0x15   : > { %p1449_p13 = pnand %p1447_p12, %p1444_p11 }
  0x17   : > { %1452 = shalt.err (!%p1449_p13)
}
  0x18   : > { %s1453_s4 = scalar_lea.vmem %s129_s20, 2560  ;;  %p1461_p6 = scmp.lt.s32.totalorder %s129_s20, %s129_s20 }
  0x19   : > { %p1454_p0 = scmp.ne.s32.totalorder %s129_s20, %s1453_s4  ;;  %p1462_p1 = scmp.lt.s32.totalorder %s1453_s4, %s1453_s4 }
  0x1b   : > { %p1456_p2 = pnand %p1454_p0, %p1442_p9  ;;  %p1463_p4 = por %p1462_p1, %p1461_p6 }
  0x1d   : > { %p1457_p3 = pneg %p1456_p2 }
  0x1f   : > { %p1464_p5 = pnand %p1463_p4, %p1457_p3 }
  0x21   : > { %1467 = shalt.err (!%p1464_p5)
}
  0x22   : > { %s1568_s5 = smov 64   ;;  %s1569_s6 = smov 4  }
  0x23   : > { %1303 = dma.hbm_to_vmem [thread:$0]  (!%p1643_p7), %s1919_s1, 2560, %s129_s20, [#allocation5], %s1568_s5, %s1568_s5, %s1569_s6  }
  0x24   : > { %s1468_s11 = scalar_lea.hbm %s1920_s2, 512 }
  0x25   : > { %p1469_p8 = scmp.ne.s32.totalorder %s1920_s2, %s1468_s11  ;;  %p1475_p5 = scmp.lt.u32.totalorder %s1468_s11, %s1920_s2 }
  0x27   : > { %p1471_p1 = pnand %p1469_p8, %p1442_p9 }
  0x29   : > { %p1472_p4 = pneg %p1471_p1 }
  0x2b   : > { %p1477_p10 = pnand %p1475_p5, %p1472_p4 }
  0x2d   : > { %1480 = shalt.err (!%p1477_p10)
}
  0x2e   : > { %s1481_s20 = scalar_lea.vmem %s1647_s23, 512  ;;  %p1489_p0 = scmp.lt.s32.totalorder %s1647_s23, %s1647_s23 }
  0x2f   : > { %p1482_p11 = scmp.ne.s32.totalorder %s1647_s23, %s1481_s20  ;;  %p1490_p2 = scmp.lt.s32.totalorder %s1481_s20, %s1481_s20 }
  0x31   : > { %p1484_p12 = pnand %p1482_p11, %p1442_p9  ;;  %p1491_p3 = por %p1490_p2, %p1489_p0 }
  0x33   : > { %p1485_p13 = pneg %p1484_p12 }
  0x35   : > { %p1492_p6 = pnand %p1491_p3, %p1485_p13 }
  0x37   : > { %1495 = shalt.err (!%p1492_p6)
}
  0x38   : > { %s1570_s25 = smov 128   ;;  %s1571_s26 = smov 8  }
  0x39   : > { %1306 = dma.hbm_to_vmem [thread:$0]  (!%p1643_p7), %s1920_s2, 512, %s1647_s23, [#allocation5], %s1570_s25, %s1570_s25, %s1571_s26  }
  0x3a   : > { %s1697_s29 = sadd.s32 1, %s1564_s15   ;;  %s24_s4 = sadd.s32 1, %s1560_s14 }
  0x3b   : > { %s21_s30 = ssub.s32 %s1564_s15, %s1697_s29  ;;  %p31_p8 = scmp.ne.s32.totalorder %s1560_s14, %s1556_s13 }
  0x3c   : > { %p22_p9 = scmp.eq.s32.totalorder %s21_s30, 0  ;;  %p32_p1 = scmp.eq.s32.totalorder %s1564_s15, 0 }
  0x3d   : > { %p1313_p5 = scmp.lt.s32.totalorder %s1564_s15, 2  ;;  %s155_s6 = sand.u32 1, %s1560_s14  }
  0x3e   : > { %s1706_s5 = scalar_select %p22_p9, %s1560_s14, %s24_s4  }
  0x3f   : > { %p33_p4 = por %p32_p1, %p31_p8  ;;  %s1162_s7 = sshll.u32 %s1564_s15, 7 }
  0x40   : > { %s1161_s8 = sshll.u32 %s155_s6, 3  ;;  %s1714_s10 = scalar_lea.hbm %s1918_s0, %s1162_s7 }
  0x41   : > { %s159_s23 = scalar_lea.vmem [#allocation2], %s1161_s8  ;;  %p1716_p7 = pnand %p1313_p5, %p33_p4 }
  0x42   : > { %s166_s11 = sshll.u32 %s159_s23, 4  ;;  %s156_s15 = scalar_lea.sflag [#allocation3], %s155_s6  ;;  %s1720_s11 = int_to_ptr.vmem [resolvable:$true] %s166_s11 }
  0x43   : > { %s1496_s19 = scalar_lea.hbm %s1714_s10, 128  ;;  %p1498_p11 = pneg %p1716_p7 }
  0x44   : > { %p1497_p10 = scmp.ne.s32.totalorder %s1714_s10, %s1496_s19  ;;  %s1501_s20 = scalar_lea.hbm %s1918_s0, 256 }
  0x45   : > { %p1502_p0 = scmp.lt.u32.totalorder %s1714_s10, %s1918_s0  ;;  %p1503_p2 = scmp.lt.u32.totalorder %s1501_s20, %s1496_s19 }
  0x46   : > { %p1499_p12 = pnand %p1498_p11, %p1497_p10  ;;  %p1505_p6 = scmp.lt.u32.totalorder %s1496_s19, %s1714_s10 }
  0x47   : > { %p1504_p3 = por %p1503_p2, %p1502_p0 }
  0x48   : > { %p1500_p13 = pneg %p1499_p12 }
  0x49   : > { %p1506_p9 = por %p1505_p6, %p1504_p3 }
  0x4b   : > { %p1507_p8 = pnand %p1506_p9, %p1500_p13 }
  0x4d   : > { %1510 = shalt.err (!%p1507_p8)
}
  0x4e   : > { %s1511_s27 = scalar_lea.vmem %s1720_s11, 128  ;;  %s1572_s28 = smov [#allocation2]  }
  0x4f   : > { %p1512_p1 = scmp.ne.s32.totalorder %s1720_s11, %s1511_s27  ;;  %s1516_s30 = sshll.u32 %s1572_s28, 4  ;;  %s1517_s30 = int_to_ptr.vmem [resolvable:$false] %s1516_s30 }
  0x50   : > { %s1518_s4 = scalar_lea.vmem %s1517_s30, 256  ;;  %p1519_p10 = scmp.lt.s32.totalorder %s1720_s11, %s1517_s30 }
  0x51   : > { %p1514_p4 = pnand %p1512_p1, %p1498_p11  ;;  %p1520_p12 = scmp.lt.s32.totalorder %s1518_s4, %s1511_s27 }
  0x53   : > { %p1515_p5 = pneg %p1514_p4  ;;  %p1521_p0 = por %p1520_p12, %p1519_p10 }
  0x55   : > { %p1522_p2 = pnand %p1521_p0, %p1515_p5 }
  0x57   : > { %1525 = shalt.err (!%p1522_p2)
}
  0x58   : > { %1310 = dma.hbm_to_vmem [thread:$0]  (!%p1716_p7), %s1714_s10, 128, %s1720_s11, %s156_s15  }
  0x59   : > { %p1929_p13 = scmp.ne.s32.totalorder %s1926_s18, 0 }
  0x5a   : > { %s177_s6 = sand.u32 (!%p1929_p13), 1, %s1556_s13   ;;  %p1930_p11 = scmp.ne.s32.totalorder (!%p1929_p13), %s1925_s17, 0 }
  0x5b   : > { %175 = sbr.rel (%p1929_p13) target bundleno = 2367 (0x93f), region = 32  ;;  %s1164_s7 = sshll.u32 (!%p1929_p13), %s177_s6, 3 }
  0x5c   : > { %s178_s8 = scalar_lea.sflag (!%p1929_p13), [#allocation3], %s177_s6  ;;  %s181_s21 = scalar_lea.vmem (!%p1929_p13), [#allocation2], %s1164_s7 }
  0x62   : > { %1543 = dma.done.wait (%p1930_p11), %s178_s8, 128  }
  0x63   : > { %1545 = vsyncadd (%p1930_p11), %s178_s8, 4294967168  ;;  %p1931_p3 = scmp.eq.s32.totalorder %s1623_s16, 0 }
  0x65   : > { %1547 = dma.done.wait (%p1931_p3), [#allocation5], 3072   ;;  %p1932_p6 = pmov %p1931_p3 }
  0x66   : > { %v1573_v0 = vmov 0.0   ;;  %vm1574_vm0 = vmmov 0   ;;  %v1382_v1 = vld [vmem:[#allocation4] sm:$0xff]   ;;  %v1383_v2 = vld [vmem:[#allocation4 + $0x8] sm:$0xff]   ;;  %v1764_v3 = vld [vmem:[%s181_s21] sm:$0xff]  ;;  %vm234_vm1 = vcmask 261120   ;;  %v280_v9 = vlaneseq }
  0x67   : > { %1549 = vsyncadd (%p1932_p6), [#allocation5], 4294964224  ;;  %1230 = vmatprep.subr.bf16.mxu0 %v1573_v0  ;;  %1234 = vmatprep.mubr.msk.bf16.mxu0 %vm1574_vm0, %v1573_v0  ;;  %v217_v4 = vpack.c.bf16 %v1764_v3, %v1764_v3  ;;  %v1384_v5 = vld [vmem:[#allocation4 + $0x20] sm:$0xff]   ;;  %v1385_v6 = vld [vmem:[#allocation4 + $0x28] sm:$0xff]   ;;  %vm288_vm2 = vcmask 1040384   ;;  %vm298_vm3 = vcmask 1041408  }
  0x68   : > { %1238 = vmatprep.subr.bf16.mxu1 %v1573_v0  ;;  %1246 = vmatprep.mubr.msk.bf16.mxu1 %vm1574_vm0, %v1573_v0  ;;  %v1386_v7 = vld [vmem:[#allocation4 + $0x30] sm:$0xff]   ;;  %v1387_v8 = vld [vmem:[#allocation4 + $0x38] sm:$0xff]   ;;  %v1777_v10 = vshrl.u32 %v280_v9, 7  ;;  %vm308_vm4 = vcmask 1042432   ;;  %v1171_v36 = vld [vmem:[#allocation6] ss:$0 sm:$0xff] }
  0x69   : > { %1231 = vmatpush3.bf16.msra.mxu0 %v1382_v1  ;;  %1239 = vmatpush3.bf16.msra.mxu1 %v1384_v5  ;;  %v278_v12 = vld [vmem:[#allocation6 + $0x18] sm:$0xf]  ;;  %vm361_vm5 = vcmask 523264   ;;  %v1575_v45 = vmov 0   ;;  %s1576_s17 = smov 64   ;;  %v1577_v51 = vmov 2  }
  0x6a   : > { %1232 = vmatprep.subr.bf16.mxu0 %v1573_v0  ;;  %1240 = vmatprep.subr.bf16.mxu1 %v1573_v0  ;;  %v1780_v11 = vsub.s32 3, %v1777_v10  ;;  %v1783_v13 = vsub.s32 2, %v1777_v10  ;;  %v1786_v14 = vsub.s32 1, %v1777_v10  ;;  %v1793_v18 = vsub.s32 0, %v1777_v10  ;;  %v1178_v63 = vld [vmem:[#allocation6 + $0x1] ss:$0 sm:$0xff] }
  0x6b   : > { %1365 = vset.pattern.permute.xlu1 %v1575_v45  ;;  %v1578_v54 = vmov 1   ;;  %v1579_v55 = vmov 7   ;;  %v1580_v56 = vmov 3   ;;  %v1581_v57 = vmov 4   ;;  %v1389_v9 = vld [vmem:[#allocation4 + $0x48] sm:$0xff]   ;;  %p211_p7 = scmp.lt.s32.totalorder %s1623_s16, 1 }
  0x6c   : > { %v283_v15 = vrot.slane %v278_v12, %v1780_v11  ;;  %v293_v17 = vrot.slane %v278_v12, %v1783_v13  ;;  %v303_v23 = vrot.slane %v278_v12, %v1786_v14  ;;  %v313_v30 = vrot.slane %v278_v12, %v1793_v18 }
  0x6d   : > { %1233 = vmatpush3.bf16.msra.mxu0 %v1383_v2  ;;  %1241 = vmatpush3.bf16.msra.mxu1 %v1385_v6  ;;  %v1582_v58 = vmov 5   ;;  %v1583_v59 = vmov 6   ;;  %vm495_vm6 = vcmp.eq.s32.totalorder %v1777_v10, 0  ;;  %vm527_vm7 = vcmp.eq.s32.totalorder %v1777_v10, 1  ;;  %s1938_s16 = smov (!%p211_p7, %s1623_s16), 1 }
  0x6e   : > { %1270 = vmatprep.subr.bf16.mxu0 %v1573_v0  ;;  %1242 = vmatprep.subr.bf16.mxu1 %v1573_v0  ;;  %vm559_vm8 = vcmp.eq.s32.totalorder %v1777_v10, 2  ;;  %vm591_vm9 = vcmp.eq.s32.totalorder %v1777_v10, 3  ;;  %vm623_vm10 = vcmp.eq.s32.totalorder %v1777_v10, 4  ;;  %vm655_vm11 = vcmp.eq.s32.totalorder %v1777_v10, 5  ;;  %s1167_s18 = sshll.u32 %s1938_s16, 3 }
  0x6f   : > { %vm687_vm12 = vcmp.eq.s32.totalorder %v1777_v10, 6  ;;  %vm719_vm13 = vcmp.eq.s32.totalorder %v1777_v10, 7  ;;  %s214_s23 = scalar_lea.vmem %s1921_s3, %s1167_s18 }
  0x70   : > { %1235 = vmatmul.mubr.msk.bf16.vlgmr.msra.gmra.mrb[0].mxu0 %vm234_vm1, %v217_v4 }
  0x71   : > { %1286 = vmatprep.mubr.msk.bf16.mxu0 %vm1574_vm0, %v1573_v0  ;;  %1243 = vmatpush3.bf16.msra.mxu1 %v1386_v7 }
  0x72   : > { %1244 = vmatprep.subr.bf16.mxu1 %v1573_v0 }
  0x75   : > { %1245 = vmatpush3.bf16.msra.mxu1 %v1387_v8  ;;  %v1388_v8 = vld [vmem:[#allocation4 + $0x40] sm:$0xff]  }
  0x76   : > { %1250 = vmatprep.subr.bf16.mxu1 %v1573_v0 }
 0x143   : > { %v1789_v16 = vpop.f32.mrb[0].mxu0 }
 0x144   : > { %v286_v19 = vrot.slane %v1789_v16, 7  ;;  %v296_v20 = vrot.slane %v1789_v16, 6  ;;  %v306_v21 = vrot.slane %v1789_v16, 5  ;;  %v1236_v22 = vpop.f32.mrb[1].mxu0  ;;  %v284_v28 = vmul.f32 %v283_v15, %v1789_v16 }
 0x145   : > { %v275_v24 = vpop.f32.mrb[2].mxu0  ;;  %v1180_v60 = vmul.f32 -1.442695, %v1789_v16 }
 0x146   : > { %v289_v25 = vsel %vm288_vm2, 0.0, %v286_v19  ;;  %v299_v26 = vsel %vm298_vm3, 0.0, %v296_v20  ;;  %v1237_v27 = vpop.f32.mrb[3].mxu0  ;;  %v309_v31 = vsel %vm308_vm4, 0.0, %v306_v21  ;;  %v1391_v19 = vld [vmem:[#allocation4 + $0x58] sm:$0xff]  }
 0x147   : > { %v294_v29 = vmul.f32 %v293_v17, %v289_v25  ;;  %v304_v33 = vmul.f32 %v303_v23, %v299_v26  ;;  %v314_v35 = vmul.f32 %v313_v30, %v309_v31  ;;  %v1390_v17 = vld [vmem:[#allocation4 + $0x50] sm:$0xff]  }
 0x149   : > { %v295_v32 = vadd.f32 %v294_v29, %v284_v28 }
 0x14b   : > { %v305_v34 = vadd.f32 %v304_v33, %v295_v32 }
 0x14d   : > { %v315_v37 = vadd.f32 %v314_v35, %v305_v34 }
 0x14f   : > { %v320_v38 = vadd.f32 %v1171_v36, %v315_v37 }
 0x151   : > { %v1172_v39 = vmul.f32 -1.442695, %v320_v38 }
 0x153   : > { %1402 = vpow2.f32 %v1172_v39 }
 0x15d   : > { %v1403_v40 = vpop.eup %1402 }
 0x15e   : > { %v324_v41 = vadd.f32 1.0, %v1403_v40 }
 0x160   : > { %1404 = vrcp.f32 %v324_v41 }
 0x161   : > { %1406 = vpow2.f32 %v1180_v60 }
 0x16a   : > { %v1405_v42 = vpop.eup %1404 }
 0x16b   : > { %v1801_v43 = vmul.f32 %v1405_v42, %v320_v38  ;;  %v1407_v61 = vpop.eup %1406 }
 0x16c   : > { %v731_v62 = vadd.f32 1.0, %v1407_v61 }
 0x16d   : > { %v328_v44 = vpack.c.bf16 %v1801_v43, %v1801_v43 }
 0x16e   : > { %1408 = vrcp.f32 %v731_v62 }
 0x16f   : > { %1247 = vmatmul.mubr.msk.bf16.vlgmr.msra.gmra.mrb[0].mxu1 %vm361_vm5, %v328_v44 }
 0x170   : > { %1258 = vmatprep.mubr.msk.bf16.mxu1 %vm1574_vm0, %v1573_v0  ;;  %1251 = vmatpush3.bf16.msra.mxu1 %v1388_v8 }
 0x171   : > { %1252 = vmatprep.subr.bf16.mxu1 %v1573_v0 }
 0x174   : > { %1253 = vmatpush3.bf16.msra.mxu1 %v1389_v9 }
 0x175   : > { %1254 = vmatprep.subr.bf16.mxu1 %v1573_v0 }
 0x178   : > { %v1409_v4 = vpop.eup %1408  ;;  %1255 = vmatpush3.bf16.msra.mxu1 %v1390_v17 }
 0x179   : > { %v734_v6 = vmul.f32 %v1409_v4, %v1789_v16  ;;  %1256 = vmatprep.subr.bf16.mxu1 %v1573_v0  ;;  %v456_v16 = vld [vmem:[#allocation6 + $0x10] sm:$0xff] }
 0x17a   : > { %v457_v20 = vmul.f32 1.442695, %v456_v16 }
 0x17c   : > { %1257 = vmatpush3.bf16.msra.mxu1 %v1391_v19 }
 0x17d   : > { %1262 = vmatprep.subr.bf16.mxu1 %v1573_v0 }
 0x242   : > { %v399_v46 = vpop.f32.mrb[0].mxu1 }
 0x243   : > { %421 = vrot.lane.b32.xlu0 %v399_v46, %s1576_s17  ;;  %v1248_v47 = vpop.f32.mrb[1].mxu1  ;;  %v410_v1 = vadd.f32 %v1178_v63, %v399_v46 }
 0x244   : > { %v402_v48 = vpop.f32.mrb[2].mxu1 }
 0x245   : > { %v1249_v49 = vpop.f32.mrb[3].mxu1  ;;  %v412_v2 = vand.u32 2147483647, %v410_v1  ;;  %v411_v23 = vmax.f32 %v410_v1, 0.0  ;;  %v595_v48 = vsub.s32 4, %v1777_v10 }
 0x247   : > { %v413_v5 = vsub.f32 0.0, %v412_v2 }
 0x249   : > { %v414_v7 = vmul.f32 1.442695, %v413_v5 }
 0x24b   : > { %1410 = vpow2.f32 %v414_v7 }
 0x255   : > { %v1411_v12 = vpop.eup %1410 }
 0x256   : > { %v416_v15 = vadd.f32 1.0, %v1411_v12 }
 0x258   : > { %1412 = vlog2.f32 %v416_v15 }
 0x259   : > { %1414 = vpow2.f32 %v457_v20 }
 0x262   : > { %v1413_v21 = vpop.eup %1412 }
 0x263   : > { %v418_v22 = vmul.f32 0.6931472, %v1413_v21  ;;  %v1415_v25 = vpop.eup %1414  ;;  %v691_v21 = vsub.s32 7, %v1777_v10 }
 0x264   : > { %v1818_v26 = vsub.f32 0.0, %v1415_v25 }
 0x265   : > { %v1816_v24 = vadd.f32 %v418_v22, %v411_v23 }
 0x267   : > { %v466_v27 = vrot.slane %v1816_v24, %v1793_v18  ;;  %v500_v30 = vrot.slane %v1816_v24, %v1786_v14  ;;  %v532_v34 = vrot.slane %v1816_v24, %v1783_v13  ;;  %v1830_v35 = vmul.f32 %v1816_v24, %v1801_v43 }
 0x268   : > { %v564_v44 = vrot.slane %v1816_v24, %v1780_v11 }
 0x269   : > { %v467_v28 = vmul.f32 %v466_v27, %v1818_v26  ;;  %v501_v32 = vmul.f32 %v500_v30, %v1818_v26  ;;  %v533_v37 = vmul.f32 %v532_v34, %v1818_v26  ;;  %v474_v38 = vrot.slane %v1830_v35, %v1793_v18 }
 0x26a   : > { %v565_v49 = vmul.f32 %v564_v44, %v1818_v26  ;;  %v572_v7 = vrot.slane %v1830_v35, %v1780_v11  ;;  %v604_v22 = vrot.slane %v1830_v35, %v595_v48 }
 0x26b   : > { %v468_v29 = vmul.f32 1.442695, %v467_v28  ;;  %v502_v33 = vmul.f32 1.442695, %v501_v32  ;;  %v534_v42 = vmul.f32 1.442695, %v533_v37  ;;  %v692_v28 = vrot.slane %v1816_v24, %v691_v21 }
 0x26d   : > { %1416 = vpow2.f32 %v468_v29 }
 0x26e   : > { %1418 = vpow2.f32 %v502_v33  ;;  %v693_v33 = vmul.f32 %v692_v28, %v1818_v26 }
 0x26f   : > { %1420 = vpow2.f32 %v534_v42 }
 0x277   : > { %v1417_v39 = vpop.eup %1416 }
 0x2b5   : > { %v422_v50 = vpop.permute.xlu0 %421 }
 0x2b6   : > { %424 = vxpose.xlu0.b32.start.end [1/1] (short) (narrow) %v422_v50, 16  ;;  %v508_v50 = vrot.slane %v1830_v35, %v1786_v14 }
 0x2df   : > { %1374 = vset.pattern.permute.xlu0 %v1577_v51 }
 0x336   : > { %v440_v52 = vpop.trf.xlu0 }
 0x337   : > { %477 = vperm.xlu1 %1365, %v440_v52  }
 0x33a   : > { %v441_v53 = vpop.trf.xlu0 }
 0x33b   : > { %1366 = vset.pattern.permute.xlu1 %v1578_v54  ;;  %548 = vperm.xlu0 %1374, %v441_v53  }
 0x33c   : > { %510 = vperm.xlu1 %1366, %v440_v52  }
 0x33f   : > { %1381 = vset.pattern.permute.xlu0 %v1579_v55 }
 0x340   : > { %1367 = vset.pattern.permute.xlu1 %v1577_v51  ;;  %v1419_v51 = vpop.eup %1418 }
 0x341   : > { %542 = vperm.xlu1 %1367, %v440_v52   ;;  %v1421_v61 = vpop.eup %1420 }
 0x345   : > { %1368 = vset.pattern.permute.xlu1 %v1580_v56 }
 0x346   : > { %574 = vperm.xlu1 %1368, %v440_v52  }
 0x34a   : > { %1369 = vset.pattern.permute.xlu1 %v1581_v57 }
 0x34b   : > { %606 = vperm.xlu1 %1369, %v440_v52  }
 0x34f   : > { %1370 = vset.pattern.permute.xlu1 %v1582_v58 }
 0x350   : > { %638 = vperm.xlu1 %1370, %v440_v52  }
 0x354   : > { %1371 = vset.pattern.permute.xlu1 %v1583_v59 }
 0x355   : > { %670 = vperm.xlu1 %1371, %v440_v52  }
 0x359   : > { %1372 = vset.pattern.permute.xlu1 %v1575_v45  ;;  %v470_v45 = vmul.f32 0.0, %v1417_v39 }
 0x35a   : > { %484 = vperm.xlu1 %1372, %v441_v53  }
 0x35e   : > { %1373 = vset.pattern.permute.xlu1 %v1578_v54  ;;  %v596_v54 = vrot.slane %v1816_v24, %v595_v48 }
 0x35f   : > { %516 = vperm.xlu1 %1373, %v441_v53  }
 0x363   : > { %1375 = vset.pattern.permute.xlu1 %v1579_v55 }
 0x364   : > { %702 = vperm.xlu1 %1375, %v440_v52  }
 0x368   : > { %1376 = vset.pattern.permute.xlu1 %v1580_v56 }
 0x369   : > { %580 = vperm.xlu1 %1376, %v441_v53  }
 0x36d   : > { %1377 = vset.pattern.permute.xlu1 %v1581_v57  ;;  %v597_v57 = vmul.f32 %v596_v54, %v1818_v26 }
 0x36e   : > { %612 = vperm.xlu1 %1377, %v441_v53  }
 0x36f   : > { %v598_v63 = vmul.f32 1.442695, %v597_v57 }
 0x372   : > { %1378 = vset.pattern.permute.xlu1 %v1582_v58  ;;  %v627_v58 = vsub.s32 5, %v1777_v10 }
 0x373   : > { %644 = vperm.xlu1 %1378, %v441_v53  }
 0x374   : > { %v628_v1 = vrot.slane %v1816_v24, %v627_v58 }
 0x376   : > { %v629_v5 = vmul.f32 %v628_v1, %v1818_v26  ;;  %v700_v1 = vrot.slane %v1830_v35, %v691_v21 }
 0x377   : > { %1379 = vset.pattern.permute.xlu1 %v1583_v59  ;;  %v540_v59 = vrot.slane %v1830_v35, %v1783_v13 }
 0x378   : > { %676 = vperm.xlu1 %1379, %v441_v53   ;;  %v630_v15 = vmul.f32 1.442695, %v629_v5 }
 0x37c   : > { %1380 = vset.pattern.permute.xlu1 %v1579_v55  ;;  %v566_v55 = vmul.f32 1.442695, %v565_v49 }
 0x37d   : > { %708 = vperm.xlu1 %1380, %v441_v53  }
 0x37e   : > { %1422 = vpow2.f32 %v566_v55 }
 0x37f   : > { %1424 = vpow2.f32 %v598_v63 }
 0x380   : > { %1426 = vpow2.f32 %v630_v15 }
 0x381   : > { %736 = vrot.lane.b32.xlu1 %v734_v6, %s1576_s17  ;;  %v659_v6 = vsub.s32 6, %v1777_v10 }
 0x383   : > { %v660_v17 = vrot.slane %v1816_v24, %v659_v6 }
 0x385   : > { %v661_v16 = vmul.f32 %v660_v17, %v1818_v26 }
 0x387   : > { %v662_v11 = vmul.f32 1.442695, %v661_v16 }
 0x388   : > { %v1423_v8 = vpop.eup %1422 }
 0x389   : > { %v1425_v23 = vpop.eup %1424  ;;  %1428 = vpow2.f32 %v662_v11 }
 0x38a   : > { %v1427_v37 = vpop.eup %1426 }
 0x3b6   : > { %v478_v31 = vpop.permute.xlu1 %477 }
 0x3b7   : > { %v480_v41 = vmul.f32 %v478_v31, %v474_v38 }
 0x3b9   : > { %v481_v46 = vadd.f32 %v480_v41, %v470_v45  ;;  %v694_v45 = vmul.f32 1.442695, %v693_v33 }
 0x3ba   : > { %v549_v34 = vpop.permute.xlu0 %548 }
 0x3bb   : > { %v511_v36 = vpop.permute.xlu1 %510  ;;  %v504_v18 = vmul.f32 %v1419_v51, %v481_v46  ;;  %1430 = vpow2.f32 %v694_v45 }
 0x3bc   : > { %v513_v52 = vmul.f32 %v511_v36, %v508_v50  ;;  %v636_v36 = vrot.slane %v1830_v35, %v627_v58 }
 0x3be   : > { %v514_v56 = vadd.f32 %v513_v52, %v504_v18  ;;  %v668_v18 = vrot.slane %v1830_v35, %v659_v6 }
 0x3c0   : > { %v543_v40 = vpop.permute.xlu1 %542  ;;  %v536_v14 = vmul.f32 %v1421_v61, %v514_v56 }
 0x3c1   : > { %v545_v62 = vmul.f32 %v543_v40, %v540_v59 }
 0x3c3   : > { %v546_v4 = vadd.f32 %v545_v62, %v536_v14 }
 0x3c5   : > { %v575_v47 = vpop.permute.xlu1 %574  ;;  %v568_v12 = vmul.f32 %v1423_v8, %v546_v4  ;;  %v551_v24 = vmul.f32 %v549_v34, %v546_v4 }
 0x3c6   : > { %v577_v9 = vmul.f32 %v575_v47, %v572_v7 }
 0x3c7   : > { %v552_v50 = vsel %vm361_vm5, %v551_v24, 0.0 }
 0x3c8   : > { %v578_v19 = vadd.f32 %v577_v9, %v568_v12  ;;  %v553_v57 = vrot.slane %v552_v50, 4 }
 0x3ca   : > { %v607_v53 = vpop.permute.xlu1 %606  ;;  %v600_v27 = vmul.f32 %v1425_v23, %v578_v19  ;;  %v554_v5 = vadd.f32 %v553_v57, %v552_v50 }
 0x3cb   : > { %v609_v25 = vmul.f32 %v607_v53, %v604_v22  ;;  %v1429_v53 = vpop.eup %1428 }
 0x3cc   : > { %v1431_v17 = vpop.eup %1430  ;;  %v555_v22 = vrot.slane %v554_v5, 2 }
 0x3cd   : > { %v610_v32 = vadd.f32 %v609_v25, %v600_v27 }
 0x3ce   : > { %v556_v33 = vadd.f32 %v555_v22, %v554_v5  ;;  %v1392_v22 = vld [vmem:[#allocation4 + $0x10] sm:$0xff]  }
 0x3cf   : > { %v639_v60 = vpop.permute.xlu1 %638  ;;  %v632_v44 = vmul.f32 %v1427_v37, %v610_v32 }
 0x3d0   : > { %v641_v40 = vmul.f32 %v639_v60, %v636_v36  ;;  %v557_v24 = vrot.slane %v556_v33, 1 }
 0x3d2   : > { %v642_v26 = vadd.f32 %v641_v40, %v632_v44 }
 0x3d4   : > { %v671_v2 = vpop.permute.xlu1 %670  ;;  %v664_v60 = vmul.f32 %v1429_v53, %v642_v26 }
 0x3d5   : > { %v673_v58 = vmul.f32 %v671_v2, %v668_v18 }
 0x3d7   : > { %v674_v8 = vadd.f32 %v673_v58, %v664_v60  ;;  %v1179_v60 = vld [vmem:[#allocation6 + $0x2] ss:$0 sm:$0xff] }
 0x3d9   : > { %v485_v13 = vpop.permute.xlu1 %484  ;;  %v696_v25 = vmul.f32 %v1431_v17, %v674_v8 }
 0x3da   : > { %v487_v30 = vmul.f32 %v485_v13, %v481_v46 }
 0x3dc   : > { %v488_v38 = vsel %vm361_vm5, %v487_v30, 0.0 }
 0x3dd   : > { %v489_v46 = vrot.slane %v488_v38, 4 }
 0x3de   : > { %v517_v20 = vpop.permute.xlu1 %516 }
 0x3df   : > { %v519_v31 = vmul.f32 %v517_v20, %v514_v56  ;;  %v490_v52 = vadd.f32 %v489_v46, %v488_v38 }
 0x3e1   : > { %v520_v41 = vsel %vm361_vm5, %v519_v31, 0.0  ;;  %v491_v62 = vrot.slane %v490_v52, 2 }
 0x3e2   : > { %v521_v47 = vrot.slane %v520_v41, 4 }
 0x3e3   : > { %v703_v29 = vpop.permute.xlu1 %702  ;;  %v492_v13 = vadd.f32 %v491_v62, %v490_v52  ;;  %v558_v52 = vadd.f32 %v557_v24, %v556_v33  ;;  %v1394_v33 = vld [vmem:[#allocation4 + $0x60] sm:$0xff]  }
 0x3e4   : > { %v522_v54 = vadd.f32 %v521_v47, %v520_v41  ;;  %v705_v12 = vmul.f32 %v703_v29, %v700_v1  ;;  %1271 = vmatpush3.bf16.msra.mxu0 %v1394_v33 }
 0x3e5   : > { %v493_v21 = vrot.slane %v492_v13, 1  ;;  %1272 = vmatprep.subr.bf16.mxu0 %v1573_v0 }
 0x3e6   : > { %v523_v63 = vrot.slane %v522_v54, 2  ;;  %v706_v28 = vadd.f32 %v705_v12, %v696_v25 }
 0x3e7   : > { %v494_v38 = vadd.f32 %v493_v21, %v492_v13  ;;  %v1186_v21 = vld [vmem:[#allocation6 + $0x3] ss:$0 sm:$0xff] }
 0x3e8   : > { %v581_v39 = vpop.permute.xlu1 %580  ;;  %v524_v2 = vadd.f32 %v523_v63, %v522_v54  ;;  %v726_v63 = vmul.f32 %v1179_v60, %v1801_v43 }
 0x3e9   : > { %v583_v42 = vmul.f32 %v581_v39, %v578_v19 }
 0x3ea   : > { %v525_v30 = vrot.slane %v524_v2, 1 }
 0x3eb   : > { %v584_v48 = vsel %vm361_vm5, %v583_v42, 0.0 }
 0x3ec   : > { %v585_v55 = vrot.slane %v584_v48, 4  ;;  %v526_v41 = vadd.f32 %v525_v30, %v524_v2 }
 0x3ed   : > { %v613_v49 = vpop.permute.xlu1 %612 }
 0x3ee   : > { %v615_v51 = vmul.f32 %v613_v49, %v610_v32  ;;  %v586_v4 = vadd.f32 %v585_v55, %v584_v48  ;;  %v496_v49 = vsel %vm495_vm6, %v494_v38, 0.0  ;;  %v1399_v38 = vld [vmem:[#allocation4 + $0x88] sm:$0xff]  }
 0x3ef   : > { %v528_v50 = vsel %vm527_vm7, %v526_v41, %v496_v49  ;;  %v1188_v41 = vld [vmem:[#allocation6 + $0x5] ss:$0 sm:$0xff] }
 0x3f0   : > { %v616_v56 = vsel %vm361_vm5, %v615_v51, 0.0  ;;  %v587_v19 = vrot.slane %v586_v4, 2 }
 0x3f1   : > { %v617_v59 = vrot.slane %v616_v56, 4 }
 0x3f2   : > { %v645_v61 = vpop.permute.xlu1 %644  ;;  %v588_v31 = vadd.f32 %v587_v19, %v586_v4 }
 0x3f3   : > { %v647_v14 = vmul.f32 %v645_v61, %v642_v26  ;;  %v618_v7 = vadd.f32 %v617_v59, %v616_v56  ;;  %v560_v56 = vsel %vm559_vm8, %v558_v52, %v528_v50 }
 0x3f4   : > { %v589_v42 = vrot.slane %v588_v31, 1 }
 0x3f5   : > { %v648_v6 = vsel %vm361_vm5, %v647_v14, 0.0  ;;  %v619_v23 = vrot.slane %v618_v7, 2 }
 0x3f6   : > { %v649_v9 = vrot.slane %v648_v6, 4  ;;  %v590_v51 = vadd.f32 %v589_v42, %v588_v31 }
 0x3f7   : > { %v677_v15 = vpop.permute.xlu1 %676  ;;  %v620_v29 = vadd.f32 %v619_v23, %v618_v7  ;;  %v1393_v23 = vld [vmem:[#allocation4 + $0x18] sm:$0xff]  }
 0x3f8   : > { %v650_v16 = vadd.f32 %v649_v9, %v648_v6  ;;  %v679_v20 = vmul.f32 %v677_v15, %v674_v8  ;;  %v592_v58 = vsel %vm591_vm9, %v590_v51, %v560_v56 }
 0x3f9   : > { %v621_v45 = vrot.slane %v620_v29, 1 }
 0x3fa   : > { %v651_v27 = vrot.slane %v650_v16, 2  ;;  %v680_v35 = vsel %vm361_vm5, %v679_v20, 0.0 }
 0x3fb   : > { %v681_v11 = vrot.slane %v680_v35, 4  ;;  %v622_v53 = vadd.f32 %v621_v45, %v620_v29  ;;  %v1395_v29 = vld [vmem:[#allocation4 + $0x68] sm:$0xff]  }
 0x3fc   : > { %v709_v32 = vpop.permute.xlu1 %708  ;;  %v652_v37 = vadd.f32 %v651_v27, %v650_v16  ;;  %1273 = vmatpush3.bf16.msra.mxu0 %v1395_v29 }
 0x3fd   : > { %v682_v34 = vadd.f32 %v681_v11, %v680_v35  ;;  %v711_v36 = vmul.f32 %v709_v32, %v706_v28  ;;  %v624_v61 = vsel %vm623_vm10, %v622_v53, %v592_v58  ;;  %v1187_v28 = vld [vmem:[#allocation6 + $0x4] ss:$0 sm:$0xff]  ;;  %1274 = vmatprep.subr.bf16.mxu0 %v1573_v0 }
 0x3fe   : > { %v653_v47 = vrot.slane %v652_v37, 1 }
 0x3ff   : > { %v683_v39 = vrot.slane %v682_v34, 2  ;;  %v712_v40 = vsel %vm361_vm5, %v711_v36, 0.0  ;;  %v1397_v36 = vld [vmem:[#allocation4 + $0x78] sm:$0xff]  }
 0x400   : > { %v713_v44 = vrot.slane %v712_v40, 4  ;;  %v654_v54 = vadd.f32 %v653_v47, %v652_v37  ;;  %v737_v7 = vpop.permute.xlu1 %736  ;;  %v1398_v37 = vld [vmem:[#allocation4 + $0x80] sm:$0xff]  }
 0x401   : > { %v684_v46 = vadd.f32 %v683_v39, %v682_v34  ;;  %v1396_v34 = vld [vmem:[#allocation4 + $0x70] sm:$0xff]  }
 0x402   : > { %v714_v48 = vadd.f32 %v713_v44, %v712_v40  ;;  %v656_v14 = vsel %vm655_vm11, %v654_v54, %v624_v61  ;;  %1275 = vmatpush3.bf16.msra.mxu0 %v1396_v34  ;;  %v1400_v39 = vld [vmem:[#allocation4 + $0x90] sm:$0xff]   ;;  %v1401_v40 = vld [vmem:[#allocation4 + $0x98] sm:$0xff]  }
 0x403   : > { %v685_v26 = vrot.slane %v684_v46, 1  ;;  %1276 = vmatprep.subr.bf16.mxu0 %v1573_v0 }
 0x404   : > { %v715_v18 = vrot.slane %v714_v48, 2 }
 0x405   : > { %v686_v57 = vadd.f32 %v685_v26, %v684_v46 }
 0x406   : > { %v716_v55 = vadd.f32 %v715_v18, %v714_v48  ;;  %1277 = vmatpush3.bf16.msra.mxu0 %v1397_v36 }
 0x407   : > { %v688_v1 = vsel %vm687_vm12, %v686_v57, %v656_v14  ;;  %1278 = vmatprep.subr.bf16.mxu0 %v1573_v0 }
 0x408   : > { %v717_v59 = vrot.slane %v716_v55, 1 }
 0x40a   : > { %v718_v62 = vadd.f32 %v717_v59, %v716_v55  ;;  %1279 = vmatpush3.bf16.msra.mxu0 %v1398_v37 }
 0x40b   : > { %1280 = vmatprep.subr.bf16.mxu0 %v1573_v0 }
 0x40c   : > { %v720_v4 = vsel %vm719_vm13, %v718_v62, %v688_v1 }
 0x40d   : > { %v727_v5 = vadd.f32 %v726_v63, %v720_v4 }
 0x40e   : > { %1281 = vmatpush3.bf16.msra.mxu0 %v1399_v38 }
 0x40f   : > { %v739_v6 = vmul.f32 %v737_v7, %v727_v5  ;;  %1282 = vmatprep.subr.bf16.mxu0 %v1573_v0 }
 0x411   : > { %v740_v8 = vpack.c.bf16 %v739_v6, %v739_v6 }
 0x412   : > { %1283 = vmatpush3.bf16.msra.mxu0 %v1400_v39 }
 0x413   : > { %1259 = vmatmul.mubr.msk.bf16.vlgmr.msra.gmra.mrb[4].mxu1 %vm361_vm5, %v740_v8  ;;  %1284 = vmatprep.subr.bf16.mxu0 %v1573_v0  ;;  %v1192_v8 = vld [vmem:[#allocation6 + $0x6] ss:$0 sm:$0xff] }
 0x414   : > { %1266 = vmatprep.mubr.msk.bf16.mxu1 %vm1574_vm0, %v1573_v0  ;;  %1263 = vmatpush3.bf16.msra.mxu1 %v1392_v22 }
 0x415   : > { %1264 = vmatprep.subr.bf16.mxu1 %v1573_v0 }
 0x416   : > { %1285 = vmatpush3.bf16.msra.mxu0 %v1401_v40 }
 0x418   : > { %1265 = vmatpush3.bf16.msra.mxu1 %v1393_v23 }
 0x4e6   : > { %v810_v9 = vpop.f32.mrb[4].mxu1 }
 0x4e7   : > { %v811_v13 = vadd.f32 %v810_v9, %v1764_v3  ;;  %v1260_v10 = vpop.f32.mrb[5].mxu1 }
 0x4e8   : > { %v813_v12 = vpop.f32.mrb[6].mxu1 }
 0x4e9   : > { %v1261_v15 = vpop.f32.mrb[7].mxu1  ;;  %v818_v17 = vsel %vm234_vm1, %v811_v13, 0.0 }
 0x4ea   : > { %819 = vadd.xlane.f32.xlu1 %v818_v17 }
 0x577   : > { %v820_v43 = vpop.xlane.xlu1 %819 }
 0x578   : > { %v822_v2 = vmul.f32 0.03125, %v820_v43 }
 0x57a   : > { %v823_v19 = vsub.f32 %v811_v13, %v822_v2 }
 0x57c   : > { %v824_v16 = vmul.f32 %v823_v19, %v823_v19 }
 0x57e   : > { %v825_v20 = vsel %vm234_vm1, %v824_v16, 0.0 }
 0x57f   : > { %826 = vadd.xlane.f32.xlu0 %v825_v20 }
 0x60c   : > { %v827_v3 = vpop.xlane.xlu0 %826 }
 0x60d   : > { %v828_v25 = vmul.f32 0.03125, %v827_v3 }
 0x60f   : > { %v829_v27 = vadd.f32 1e-12, %v828_v25 }
 0x611   : > { %1432 = vrsqrt.f32 %v829_v27 }
 0x61b   : > { %v1433_v35 = vpop.eup %1432 }
 0x61c   : > { %v831_v11 = vmul.f32 %v1433_v35, %v823_v19  ;;  %v1201_v35 = vld [vmem:[#allocation6 + $0x7] ss:$0 sm:$0xff] }
 0x61e   : > { %v836_v30 = vmul.f32 %v1186_v21, %v831_v11  ;;  %v1202_v11 = vld [vmem:[#allocation6 + $0x8] ss:$0 sm:$0xff] }
 0x620   : > { %v1884_v31 = vadd.f32 %v1187_v28, %v836_v30 }
 0x622   : > { %v842_v32 = vpack.c.bf16 %v1884_v31, %v1884_v31 }
 0x624   : > { %1267 = vmatmul.mubr.msk.bf16.vlgmr.msra.gmra.mrb[8].mxu1 %vm234_vm1, %v842_v32 }
 0x6f7   : > { %v901_v42 = vpop.f32.mrb[8].mxu1 }
 0x6f8   : > { %v902_v44 = vadd.f32 %v1188_v41, %v901_v42  ;;  %v1268_v24 = vpop.f32.mrb[9].mxu1 }
 0x6f9   : > { %v904_v45 = vpop.f32.mrb[10].mxu1 }
 0x6fa   : > { %v908_v46 = vmul.f32 0.70710677, %v902_v44  ;;  %v1269_v47 = vpop.f32.mrb[11].mxu1  ;;  %v907_v4 = vmul.f32 0.5, %v902_v44 }
 0x6fc   : > { %v909_v48 = vand.u32 2147483647, %v908_v46  ;;  %vm929_vm14 = vcmp.ge.f32.partialorder %v908_v46, 0.0 }
 0x6fe   : > { %v910_v49 = vmul.f32 0.3275911, %v909_v48  ;;  %v923_v50 = vsub.f32 0.0, %v909_v48 }
 0x700   : > { %v911_v26 = vadd.f32 1.0, %v910_v49  ;;  %v924_v18 = vmul.f32 %v923_v50, %v909_v48 }
 0x702   : > { %1434 = vrcp.f32 %v911_v26  ;;  %v925_v54 = vmul.f32 1.442695, %v924_v18 }
 0x704   : > { %1436 = vpow2.f32 %v925_v54 }
 0x70c   : > { %v1435_v51 = vpop.eup %1434 }
 0x70d   : > { %v914_v52 = vmul.f32 1.0614054, %v1435_v51 }
 0x70e   : > { %v1437_v61 = vpop.eup %1436 }
 0x70f   : > { %v915_v53 = vadd.f32 -1.4531521, %v914_v52 }
 0x711   : > { %v916_v55 = vmul.f32 %v1435_v51, %v915_v53 }
 0x713   : > { %v917_v0 = vadd.f32 1.4214138, %v916_v55 }
 0x715   : > { %v918_v56 = vmul.f32 %v1435_v51, %v917_v0 }
 0x717   : > { %v919_v57 = vadd.f32 -0.28449672, %v918_v56 }
 0x719   : > { %v920_v58 = vmul.f32 %v1435_v51, %v919_v57 }
 0x71b   : > { %v921_v59 = vadd.f32 0.2548296, %v920_v58 }
 0x71d   : > { %v922_v60 = vmul.f32 %v1435_v51, %v921_v59 }
 0x71f   : > { %v927_v62 = vmul.f32 %v1437_v61, %v922_v60 }
 0x721   : > { %v928_v14 = vsub.f32 1.0, %v927_v62 }
 0x723   : > { %v930_v63 = vsub.f32 0.0, %v928_v14 }
 0x725   : > { %v931_v1 = vsel %vm929_vm14, %v928_v14, %v930_v63 }
 0x726   : > { %v932_v5 = vadd.f32 1.0, %v931_v1 }
 0x728   : > { %v933_v7 = vmul.f32 %v932_v5, %v907_v4 }
 0x72a   : > { %v934_v6 = vpack.c.bf16 %v933_v7, %v933_v7 }
 0x72c   : > { %1287 = vmatmul.mubr.bf16.vlgmr.msra.gmra.mrb[4].mxu0 %v934_v6 }
 0x7ff   : > { %v1038_v9 = vpop.f32.mrb[4].mxu0 }
 0x800   : > { %v1039_v13 = vadd.f32 %v1192_v8, %v1038_v9  ;;  %v1288_v10 = vpop.f32.mrb[5].mxu0 }
 0x801   : > { %v1041_v12 = vpop.f32.mrb[6].mxu0 }
 0x802   : > { %v1289_v15 = vpop.f32.mrb[7].mxu0  ;;  %v1044_v17 = vadd.f32 %v1039_v13, %v1884_v31 }
 0x804   : > { %v1047_v43 = vsel %vm234_vm1, %v1044_v17, 0.0 }
 0x805   : > { %1048 = vadd.xlane.f32.xlu1 %v1047_v43 }
 0x892   : > { %v1049_v2 = vpop.xlane.xlu1 %1048 }
 0x893   : > { %v1050_v19 = vmul.f32 0.03125, %v1049_v2 }
 0x895   : > { %v1051_v16 = vsub.f32 %v1044_v17, %v1050_v19 }
 0x897   : > { %v1052_v20 = vmul.f32 %v1051_v16, %v1051_v16 }
 0x899   : > { %v1053_v22 = vsel %vm234_vm1, %v1052_v20, 0.0 }
 0x89a   : > { %1054 = vadd.xlane.f32.xlu1 %v1053_v22 }
 0x927   : > { %v1055_v23 = vpop.xlane.xlu1 %1054 }
 0x928   : > { %v1056_v3 = vmul.f32 0.03125, %v1055_v23 }
 0x92a   : > { %v1057_v25 = vadd.f32 1e-12, %v1056_v3 }
 0x92c   : > { %1438 = vrsqrt.f32 %v1057_v25 }
 0x936   : > { %v1439_v27 = vpop.eup %1438 }
 0x937   : > { %v1059_v21 = vmul.f32 %v1439_v27, %v1051_v16 }
 0x939   : > { %v1064_v28 = vmul.f32 %v1201_v35, %v1059_v21 }
 0x93b   : > { %v1069_v30 = vadd.f32 %v1202_v11, %v1064_v28 }
 0x93d   : > { %v1070_v31 = vsel %vm234_vm1, %v1069_v30, 0.0 }
 0x93e   : > { %1071 = vst [vmem:[%s214_s23] sm:$0xff] %v1070_v31 }
 0x93f PF: > { %p14_p9 = scmp.ge.s32.totalorder %s1697_s29, 4   ;;  %s1933_s12 = smov %s1556_s13 }
 0x940   : > { %s1934_s13 = smov %s1560_s14  ;;  %s1935_s14 = smov %s1706_s5 }
 0x941   : > { %s1936_s15 = smov %s1697_s29  ;;  %16 = sbr.rel (!%p14_p9) target bundleno = 4 (0x4), region = 80 }
 0x948   :  { %1091 = vsyncpa [#allocation3], 1 }
 0x949   :  { %1093 = vsyncpa [#allocation3 + $0x1], 1 }
 0x94a   :  { %1094 = vsyncpa [#allocation5], 1 }

</bundles_post_ra>
